<compile_context>
chip_gen: v7x
topology: tpu7x:2x2x1
jax: 0.10.0
libtpu: 0.0.40
codegen_flags: <defaults>
</compile_context>

<pallas_src>
import jax
import jax.numpy as jnp
from jax.experimental import pallas as pl
from jax.experimental.pallas import tpu as pltpu


# ---------------------------------------------------------------------------
# Kernel
# ---------------------------------------------------------------------------
def _mlp_kernel(x_ref, w1_ref, b1_ref, w2_ref, b2_ref, w3_ref, b3_ref, o_ref):
    # x streams as f32 from HBM; cast to bf16 on-chip (VPU, hides under DMA).
    x = x_ref[...].astype(jnp.bfloat16)

    # layer 1: Linear(dim,128) + ReLU        (BN1 folded into w2/b2)
    h = jnp.dot(x, w1_ref[...], preferred_element_type=jnp.float32)
    h = jnp.maximum(h + b1_ref[...], 0.0)

    # layer 2: Linear(128,32) + ReLU         (BN2 folded into w3/b3)
    h = jnp.dot(h.astype(jnp.bfloat16), w2_ref[...],
                preferred_element_type=jnp.float32)
    h = jnp.maximum(h + b2_ref[...], 0.0)

    # layer 3: Linear(32, n_out)             (n_out possibly lane-padded)
    out = jnp.dot(h.astype(jnp.bfloat16), w3_ref[...],
                  preferred_element_type=jnp.float32)
    o_ref[...] = (out + b3_ref[...]).astype(o_ref.dtype)


# ---------------------------------------------------------------------------
# Wrapper helpers
# ---------------------------------------------------------------------------
def _round_up(v, m):
    return -(-v // m) * m


def _fold_bn(params):
    """Fold eval-mode BatchNorm affines into the following Linear (exact)."""
    s1, t1 = params["bn1_scale"], params["bn1_shift"]   # (1,128)
    s2, t2 = params["bn2_scale"], params["bn2_shift"]   # (1,32)
    w2 = params["w2"] * s1.T                             # scale rows of (128,32)
    b2 = params["b2"] + t1 @ params["w2"]
    w3 = params["w3"] * s2.T
    b3 = params["b3"] + t2 @ params["w3"]
    return params["w1"], params["b1"], w2, b2, w3, b3


def _vmem_capacity_bytes():
    try:
        return int(pltpu.get_tpu_info().vmem_capacity_bytes)
    except Exception:
        return 64 * 1024 * 1024          # conservative (v7x-sized) fallback


def _choose_tm(n_rows, dim, n_out, *, vmem_bytes, num_cores):
    """Pick the row tile from the chip's VMEM capacity.

    Weights are resident (single-buffered bf16); the f32 x tile and bf16
    output tile are double-buffered by the pipeline.
    """
    budget = int(vmem_bytes * 0.45)
    weight_bytes = 2 * (dim * 128 + 128 * 32 + 32 * n_out)   # bf16 weights
    weight_bytes += 4 * (128 + 32 + n_out)                   # f32 biases
    row_bytes = 2 * 4 * dim          # double-buffered f32 x tile
    row_bytes += 2 * 2 * n_out       # double-buffered bf16 out tile
    row_bytes += 6 * (128 + 32)      # f32 + bf16 intermediate activations
    tm_cap = 4096 if vmem_bytes > 96 * 1024 * 1024 else 2048

    tm = max(budget - weight_bytes, row_bytes) // row_bytes
    tm = max(256, min(tm_cap, (tm // 256) * 256))

    # Enough grid steps for DMA/compute overlap on each TensorCore (v7x runs
    # two TCs over the "parallel" row axis), but never below 512-row tiles —
    # smaller tiles fall off the HBM roofline.
    target_steps = 3 * num_cores
    if n_rows >= target_steps * 512:
        tm = min(tm, max(512, ((n_rows // target_steps) // 256) * 256))

    # Do not over-pad small inputs; keep sublane (8) alignment.
    tm = min(tm, _round_up(n_rows, 8))
    return max(tm, 8)


def _pallas_forward(x, w1, b1, w2, b2, w3, b3, *, tm, vmem_limit,
                    single_buffer_weights):
    n_rows, dim = x.shape
    h1, h2 = w1.shape[1], w2.shape[1]
    n_out = w3.shape[1]

    if single_buffer_weights:
        # Constant index map -> resident; single buffer frees VMEM for bigger
        # row tiles (matters most on v7x's 64 MiB and for dim in the 1000s).
        def full(shape):
            return pl.BlockSpec(shape, lambda i: (0, 0),
                                pipeline_mode=pl.Buffered(1))
    else:
        def full(shape):
            return pl.BlockSpec(shape, lambda i: (0, 0))

    return pl.pallas_call(
        _mlp_kernel,
        out_shape=jax.ShapeDtypeStruct((n_rows, n_out), jnp.bfloat16),
        grid_spec=pltpu.PrefetchScalarGridSpec(
            num_scalar_prefetch=0,
            grid=(pl.cdiv(n_rows, tm),),
            in_specs=[
                pl.BlockSpec((tm, dim), lambda i: (i, 0)),   # f32 x tile (streams)
                full((dim, h1)), full((1, h1)),
                full((h1, h2)), full((1, h2)),
                full((h2, n_out)), full((1, n_out)),
            ],
            out_specs=pl.BlockSpec((tm, n_out), lambda i: (i, 0)),
        ),
        compiler_params=pltpu.CompilerParams(
            dimension_semantics=("parallel",),
            vmem_limit_bytes=vmem_limit),
    )(x, w1, b1, w2, b2, w3, b3)


# ---------------------------------------------------------------------------
# Public forward
# ---------------------------------------------------------------------------
def pixel_classifier_forward(x, params):
    """x: [N, dim] float32.  params: dict of weights / BN running stats."""
    n_rows, dim = x.shape
    w1, b1, w2, b2, w3, b3 = _fold_bn(params)
    n_class = w3.shape[1]

    # Lane-dense final layer: pad output width to a multiple of 128 when the
    # input features dominate traffic (real datasetGAN case, dim >> 128).
    pad_out = (dim >= 128) and (n_class % 128 != 0)
    n_out = _round_up(n_class, 128) if pad_out else n_class
    if pad_out:
        w3 = jnp.pad(w3, ((0, 0), (0, n_out - n_class)))
        b3 = jnp.pad(b3, ((0, 0), (0, n_out - n_class)))

    vmem = _vmem_capacity_bytes()
    num_cores = 2 if vmem <= 64 * 1024 * 1024 else 1   # v7x: 2 TCs, 64 MiB VMEM
    tm = _choose_tm(n_rows, dim, n_out, vmem_bytes=vmem, num_cores=num_cores)
    vmem_limit = int(vmem * 3 // 4)                    # 48 MiB v7x, 96 MiB v5e/v6e

    # Weights cast once to bf16 (tiny vs. x); x itself is NOT cast or padded
    # in the wrapper — it streams as f32 and is cast on-chip in the kernel.
    w1_bf = w1.astype(jnp.bfloat16)
    w2_bf = w2.astype(jnp.bfloat16)
    w3_bf = w3.astype(jnp.bfloat16)

    try:
        out = _pallas_forward(x, w1_bf, b1, w2_bf, b2, w3_bf, b3,
                              tm=tm, vmem_limit=vmem_limit,
                              single_buffer_weights=True)
    except Exception:
        # Fallback for jax builds without BlockSpec(pipeline_mode=...):
        # default double-buffered resident weights.
        out = _pallas_forward(x, w1_bf, b1, w2_bf, b2, w3_bf, b3,
                              tm=tm, vmem_limit=vmem_limit,
                              single_buffer_weights=False)

    # Slice off lane padding; cast the narrow logits back to f32 (cheap:
    # n_class columns only).
    return out[:, :n_class].astype(jnp.float32)


# ---------------------------------------------------------------------------
# Deterministic parameter construction (numpy_class < 32 branch)
# ---------------------------------------------------------------------------
def make_params(key, dim, numpy_class, gain=0.02, eps=1e-5):
    """dim -> 128 -> 32 -> numpy_class; Linear weights ~ N(0, gain) as in
    init_weights('normal'), biases zero; BatchNorm running stats expressed as
    per-feature scale/shift (eval mode)."""
    assert numpy_class < 32, "this script instantiates the <32-class branch"
    h1, h2 = 128, 32
    ks = jax.random.split(key, 8)

    def bn_affine(kmean, kvar, feat):
        gamma = jnp.ones((1, feat), jnp.float32)
        beta = jnp.zeros((1, feat), jnp.float32)
        running_mean = 0.1 * jax.random.normal(kmean, (1, feat), jnp.float32)
        running_var = 1.0 + 0.1 * jax.random.uniform(kvar, (1, feat), jnp.float32)
        scale = gamma / jnp.sqrt(running_var + eps)
        shift = beta - running_mean * scale
        return scale, shift

    s1, t1 = bn_affine(ks[3], ks[4], h1)
    s2, t2 = bn_affine(ks[5], ks[6], h2)

    return {
        "w1": gain * jax.random.normal(ks[0], (dim, h1), jnp.float32),
        "b1": jnp.zeros((1, h1), jnp.float32),
        "bn1_scale": s1, "bn1_shift": t1,
        "w2": gain * jax.random.normal(ks[1], (h1, h2), jnp.float32),
        "b2": jnp.zeros((1, h2), jnp.float32),
        "bn2_scale": s2, "bn2_shift": t2,
        "w3": gain * jax.random.normal(ks[2], (h2, numpy_class), jnp.float32),
        "b3": jnp.zeros((1, numpy_class), jnp.float32),
    }


def reference_forward(x, p):
    """Pure-f32 reference of the PyTorch eval-mode forward."""
    h = jnp.maximum(x @ p["w1"] + p["b1"], 0.0) * p["bn1_scale"] + p["bn1_shift"]
    h = jnp.maximum(h @ p["w2"] + p["b2"], 0.0) * p["bn2_scale"] + p["bn2_shift"]
    return h @ p["w3"] + p["b3"]


if __name__ == "__main__":
    key = jax.random.PRNGKey(0)
    k_x, k_p, k_x2, k_p2 = jax.random.split(key, 4)
    n_class = 8   # numpy_class < 32 branch

    # Case A: narrow features, N not a multiple of 8 (exercises the masked
    # tail rows and the unpadded 8-column output path).
    N, dim = 300, 32
    x = jax.random.normal(k_x, (N, dim), jnp.float32)
    params = make_params(k_p, dim, n_class)
    out = jax.block_until_ready(pixel_classifier_forward(x, params))
    ref = reference_forward(x, params)
    assert out.shape == (N, n_class)
    err = float(jnp.max(jnp.abs(out - ref)))
    assert jnp.allclose(out, ref, atol=4e-3, rtol=3e-2), f"max abs err {err}"

    # Case B: wider features -> lane-padded bf16 output, multi-step parallel
    # grid with a partial final row tile.
    N2, dim2 = 4096, 256
    x2 = jax.random.normal(k_x2, (N2, dim2), jnp.float32)
    params2 = make_params(k_p2, dim2, n_class)
    out2 = jax.block_until_ready(pixel_classifier_forward(x2, params2))
    ref2 = reference_forward(x2, params2)
    assert out2.shape == (N2, n_class)
    err2 = float(jnp.max(jnp.abs(out2 - ref2)))
    assert jnp.allclose(out2, ref2, atol=4e-3, rtol=3e-2), f"max abs err {err2}"

    print("KERNEL_OK")
</pallas_src>

<mosaic_0001>
module attributes {stable_mosaic.version = 11 : i64} {
  func.func @_mlp_kernel(%arg0: i32, %arg1: memref<304x32xf32, #tpu.memory_space<vmem>>, %arg2: memref<32x128xbf16, #tpu.memory_space<vmem>>, %arg3: memref<1x128xf32, #tpu.memory_space<vmem>>, %arg4: memref<128x32xbf16, #tpu.memory_space<vmem>>, %arg5: memref<1x32xf32, #tpu.memory_space<vmem>>, %arg6: memref<32x8xbf16, #tpu.memory_space<vmem>>, %arg7: memref<1x8xf32, #tpu.memory_space<vmem>>, %arg8: memref<304x8xbf16, #tpu.memory_space<vmem>>) attributes {dimension_semantics = [#tpu.dimension_semantics<parallel>], iteration_bounds = array<i64: 1>, scalar_prefetch = 0 : i64, scratch_operands = 0 : i64, tpu.core_type = #tpu.core_type<tc>, window_params = [{transform_indices = @transform_0, window_bounds = array<i64: 304, 32>}, {pipeline_mode = #tpu.pipeline_mode<synchronous>, transform_indices = @transform_1, window_bounds = array<i64: 32, 128>}, {pipeline_mode = #tpu.pipeline_mode<synchronous>, transform_indices = @transform_2, window_bounds = array<i64: 1, 128>}, {pipeline_mode = #tpu.pipeline_mode<synchronous>, transform_indices = @transform_3, window_bounds = array<i64: 128, 32>}, {pipeline_mode = #tpu.pipeline_mode<synchronous>, transform_indices = @transform_4, window_bounds = array<i64: 1, 32>}, {pipeline_mode = #tpu.pipeline_mode<synchronous>, transform_indices = @transform_5, window_bounds = array<i64: 32, 8>}, {pipeline_mode = #tpu.pipeline_mode<synchronous>, transform_indices = @transform_6, window_bounds = array<i64: 1, 8>}, {transform_indices = @transform_7, window_bounds = array<i64: 304, 8>}]} {
    %c0 = arith.constant 0 : index
    %c0_0 = arith.constant 0 : index
    %0 = vector.load %arg1[%c0, %c0_0] : memref<304x32xf32, #tpu.memory_space<vmem>>, vector<304x32xf32>
    %1 = arith.truncf %0 : vector<304x32xf32> to vector<304x32xbf16>
    %c0_1 = arith.constant 0 : index
    %c0_2 = arith.constant 0 : index
    %2 = vector.load %arg2[%c0_1, %c0_2] : memref<32x128xbf16, #tpu.memory_space<vmem>>, vector<32x128xbf16>
    %cst = arith.constant dense<0.000000e+00> : vector<304x128xf32>
    %3 = tpu.matmul %1, %2, %cst {dimension_numbers = #tpu.dot_dimension_numbers<[1], [0], [0], [1], [0, 0, 1, 1], [], []>} : vector<304x32xbf16>, vector<32x128xbf16>, vector<304x128xf32> -> vector<304x128xf32>
    %c0_3 = arith.constant 0 : index
    %c0_4 = arith.constant 0 : index
    %4 = vector.load %arg3[%c0_3, %c0_4] : memref<1x128xf32, #tpu.memory_space<vmem>>, vector<1x128xf32>
    %5 = vector.broadcast %4 : vector<1x128xf32> to vector<304x128xf32>
    %6 = arith.addf %3, %5 : vector<304x128xf32>
    %cst_5 = arith.constant 0.000000e+00 : f32
    %7 = vector.broadcast %cst_5 : f32 to vector<304x128xf32>
    %8 = arith.maximumf %6, %7 : vector<304x128xf32>
    %9 = arith.truncf %8 : vector<304x128xf32> to vector<304x128xbf16>
    %c0_6 = arith.constant 0 : index
    %c0_7 = arith.constant 0 : index
    %10 = vector.load %arg4[%c0_6, %c0_7] : memref<128x32xbf16, #tpu.memory_space<vmem>>, vector<128x32xbf16>
    %cst_8 = arith.constant dense<0.000000e+00> : vector<304x32xf32>
    %11 = tpu.matmul %9, %10, %cst_8 {dimension_numbers = #tpu.dot_dimension_numbers<[1], [0], [0], [1], [0, 0, 1, 1], [], []>} : vector<304x128xbf16>, vector<128x32xbf16>, vector<304x32xf32> -> vector<304x32xf32>
    %c0_9 = arith.constant 0 : index
    %c0_10 = arith.constant 0 : index
    %12 = vector.load %arg5[%c0_9, %c0_10] : memref<1x32xf32, #tpu.memory_space<vmem>>, vector<1x32xf32>
    %13 = vector.broadcast %12 : vector<1x32xf32> to vector<304x32xf32>
    %14 = arith.addf %11, %13 : vector<304x32xf32>
    %cst_11 = arith.constant 0.000000e+00 : f32
    %15 = vector.broadcast %cst_11 : f32 to vector<304x32xf32>
    %16 = arith.maximumf %14, %15 : vector<304x32xf32>
    %17 = arith.truncf %16 : vector<304x32xf32> to vector<304x32xbf16>
    %c0_12 = arith.constant 0 : index
    %c0_13 = arith.constant 0 : index
    %18 = vector.load %arg6[%c0_12, %c0_13] : memref<32x8xbf16, #tpu.memory_space<vmem>>, vector<32x8xbf16>
    %cst_14 = arith.constant dense<0.000000e+00> : vector<304x8xf32>
    %19 = tpu.matmul %17, %18, %cst_14 {dimension_numbers = #tpu.dot_dimension_numbers<[1], [0], [0], [1], [0, 0, 1, 1], [], []>} : vector<304x32xbf16>, vector<32x8xbf16>, vector<304x8xf32> -> vector<304x8xf32>
    %c0_15 = arith.constant 0 : index
    %c0_16 = arith.constant 0 : index
    %20 = vector.load %arg7[%c0_15, %c0_16] : memref<1x8xf32, #tpu.memory_space<vmem>>, vector<1x8xf32>
    %21 = vector.broadcast %20 : vector<1x8xf32> to vector<304x8xf32>
    %22 = arith.addf %19, %21 : vector<304x8xf32>
    %23 = arith.truncf %22 : vector<304x8xf32> to vector<304x8xbf16>
    %c0_17 = arith.constant 0 : index
    %c0_18 = arith.constant 0 : index
    %24 = vector.load %arg8[%c0_17, %c0_18] : memref<304x8xbf16, #tpu.memory_space<vmem>>, vector<304x8xbf16>
    tpu.vector_store %arg8[%c0_17, %c0_18], %23 {strides = array<i32>} : memref<304x8xbf16, #tpu.memory_space<vmem>>, vector<304x8xbf16>,
    return
  }
  func.func @transform_0(%arg0: i32) -> (i32, i32) {
    %c0_i32 = arith.constant 0 : i32
    %c0_i32_0 = arith.constant 0 : i32
    return %arg0, %c0_i32 : i32, i32
  }
  func.func @transform_1(%arg0: i32) -> (i32, i32) {
    %c0_i32 = arith.constant 0 : i32
    %c0_i32_0 = arith.constant 0 : i32
    %c0_i32_1 = arith.constant 0 : i32
    return %c0_i32, %c0_i32_0 : i32, i32
  }
  func.func @transform_2(%arg0: i32) -> (i32, i32) {
    %c0_i32 = arith.constant 0 : i32
    %c0_i32_0 = arith.constant 0 : i32
    %c0_i32_1 = arith.constant 0 : i32
    return %c0_i32, %c0_i32_0 : i32, i32
  }
  func.func @transform_3(%arg0: i32) -> (i32, i32) {
    %c0_i32 = arith.constant 0 : i32
    %c0_i32_0 = arith.constant 0 : i32
    %c0_i32_1 = arith.constant 0 : i32
    return %c0_i32, %c0_i32_0 : i32, i32
  }
  func.func @transform_4(%arg0: i32) -> (i32, i32) {
    %c0_i32 = arith.constant 0 : i32
    %c0_i32_0 = arith.constant 0 : i32
    %c0_i32_1 = arith.constant 0 : i32
    return %c0_i32, %c0_i32_0 : i32, i32
  }
  func.func @transform_5(%arg0: i32) -> (i32, i32) {
    %c0_i32 = arith.constant 0 : i32
    %c0_i32_0 = arith.constant 0 : i32
    %c0_i32_1 = arith.constant 0 : i32
    return %c0_i32, %c0_i32_0 : i32, i32
  }
  func.func @transform_6(%arg0: i32) -> (i32, i32) {
    %c0_i32 = arith.constant 0 : i32
    %c0_i32_0 = arith.constant 0 : i32
    %c0_i32_1 = arith.constant 0 : i32
    return %c0_i32, %c0_i32_0 : i32, i32
  }
  func.func @transform_7(%arg0: i32) -> (i32, i32) {
    %c0_i32 = arith.constant 0 : i32
    %c0_i32_0 = arith.constant 0 : i32
    return %arg0, %c0_i32 : i32, i32
  }
}

module attributes {stable_mosaic.version = 11 : i64} {
  func.func @_mlp_kernel(%arg0: i32, %arg1: memref<304x32xf32, #tpu.memory_space<vmem>>, %arg2: memref<32x128xbf16, #tpu.memory_space<vmem>>, %arg3: memref<1x128xf32, #tpu.memory_space<vmem>>, %arg4: memref<128x32xbf16, #tpu.memory_space<vmem>>, %arg5: memref<1x32xf32, #tpu.memory_space<vmem>>, %arg6: memref<32x8xbf16, #tpu.memory_space<vmem>>, %arg7: memref<1x8xf32, #tpu.memory_space<vmem>>, %arg8: memref<304x8xbf16, #tpu.memory_space<vmem>>) attributes {dimension_semantics = [#tpu.dimension_semantics<parallel>], iteration_bounds = array<i64: 1>, scalar_prefetch = 0 : i64, scratch_operands = 0 : i64, tpu.core_type = #tpu.core_type<tc>, window_params = [{transform_indices = @transform_0, window_bounds = array<i64: 304, 32>}, {pipeline_mode = #tpu.pipeline_mode<synchronous>, transform_indices = @transform_1, window_bounds = array<i64: 32, 128>}, {pipeline_mode = #tpu.pipeline_mode<synchronous>, transform_indices = @transform_2, window_bounds = array<i64: 1, 128>}, {pipeline_mode = #tpu.pipeline_mode<synchronous>, transform_indices = @transform_3, window_bounds = array<i64: 128, 32>}, {pipeline_mode = #tpu.pipeline_mode<synchronous>, transform_indices = @transform_4, window_bounds = array<i64: 1, 32>}, {pipeline_mode = #tpu.pipeline_mode<synchronous>, transform_indices = @transform_5, window_bounds = array<i64: 32, 8>}, {pipeline_mode = #tpu.pipeline_mode<synchronous>, transform_indices = @transform_6, window_bounds = array<i64: 1, 8>}, {transform_indices = @transform_7, window_bounds = array<i64: 304, 8>}]} {
    %c0 = arith.constant 0 : index
    %c0_0 = arith.constant 0 : index
    %0 = vector.load %arg1[%c0, %c0_0] : memref<304x32xf32, #tpu.memory_space<vmem>>, vector<304x32xf32>
    %1 = arith.truncf %0 : vector<304x32xf32> to vector<304x32xbf16>
    %c0_1 = arith.constant 0 : index
    %c0_2 = arith.constant 0 : index
    %2 = vector.load %arg2[%c0_1, %c0_2] : memref<32x128xbf16, #tpu.memory_space<vmem>>, vector<32x128xbf16>
    %cst = arith.constant dense<0.000000e+00> : vector<304x128xf32>
    %3 = tpu.matmul %1, %2, %cst {dimension_numbers = #tpu.dot_dimension_numbers<[1], [0], [0], [1], [0, 0, 1, 1], [], []>} : vector<304x32xbf16>, vector<32x128xbf16>, vector<304x128xf32> -> vector<304x128xf32>
    %c0_3 = arith.constant 0 : index
    %c0_4 = arith.constant 0 : index
    %4 = vector.load %arg3[%c0_3, %c0_4] : memref<1x128xf32, #tpu.memory_space<vmem>>, vector<1x128xf32>
    %5 = vector.broadcast %4 : vector<1x128xf32> to vector<304x128xf32>
    %6 = arith.addf %3, %5 : vector<304x128xf32>
    %cst_5 = arith.constant 0.000000e+00 : f32
    %7 = vector.broadcast %cst_5 : f32 to vector<304x128xf32>
    %8 = arith.maximumf %6, %7 : vector<304x128xf32>
    %9 = arith.truncf %8 : vector<304x128xf32> to vector<304x128xbf16>
    %c0_6 = arith.constant 0 : index
    %c0_7 = arith.constant 0 : index
    %10 = vector.load %arg4[%c0_6, %c0_7] : memref<128x32xbf16, #tpu.memory_space<vmem>>, vector<128x32xbf16>
    %cst_8 = arith.constant dense<0.000000e+00> : vector<304x32xf32>
    %11 = tpu.matmul %9, %10, %cst_8 {dimension_numbers = #tpu.dot_dimension_numbers<[1], [0], [0], [1], [0, 0, 1, 1], [], []>} : vector<304x128xbf16>, vector<128x32xbf16>, vector<304x32xf32> -> vector<304x32xf32>
    %c0_9 = arith.constant 0 : index
    %c0_10 = arith.constant 0 : index
    %12 = vector.load %arg5[%c0_9, %c0_10] : memref<1x32xf32, #tpu.memory_space<vmem>>, vector<1x32xf32>
    %13 = vector.broadcast %12 : vector<1x32xf32> to vector<304x32xf32>
    %14 = arith.addf %11, %13 : vector<304x32xf32>
    %cst_11 = arith.constant 0.000000e+00 : f32
    %15 = vector.broadcast %cst_11 : f32 to vector<304x32xf32>
    %16 = arith.maximumf %14, %15 : vector<304x32xf32>
    %17 = arith.truncf %16 : vector<304x32xf32> to vector<304x32xbf16>
    %c0_12 = arith.constant 0 : index
    %c0_13 = arith.constant 0 : index
    %18 = vector.load %arg6[%c0_12, %c0_13] : memref<32x8xbf16, #tpu.memory_space<vmem>>, vector<32x8xbf16>
    %cst_14 = arith.constant dense<0.000000e+00> : vector<304x8xf32>
    %19 = tpu.matmul %17, %18, %cst_14 {dimension_numbers = #tpu.dot_dimension_numbers<[1], [0], [0], [1], [0, 0, 1, 1], [], []>} : vector<304x32xbf16>, vector<32x8xbf16>, vector<304x8xf32> -> vector<304x8xf32>
    %c0_15 = arith.constant 0 : index
    %c0_16 = arith.constant 0 : index
    %20 = vector.load %arg7[%c0_15, %c0_16] : memref<1x8xf32, #tpu.memory_space<vmem>>, vector<1x8xf32>
    %21 = vector.broadcast %20 : vector<1x8xf32> to vector<304x8xf32>
    %22 = arith.addf %19, %21 : vector<304x8xf32>
    %23 = arith.truncf %22 : vector<304x8xf32> to vector<304x8xbf16>
    %c0_17 = arith.constant 0 : index
    %c0_18 = arith.constant 0 : index
    %24 = vector.load %arg8[%c0_17, %c0_18] : memref<304x8xbf16, #tpu.memory_space<vmem>>, vector<304x8xbf16>
    tpu.vector_store %arg8[%c0_17, %c0_18], %23 {strides = array<i32>} : memref<304x8xbf16, #tpu.memory_space<vmem>>, vector<304x8xbf16>,
    return
  }
  func.func @transform_0(%arg0: i32) -> (i32, i32) {
    %c0_i32 = arith.constant 0 : i32
    %c0_i32_0 = arith.constant 0 : i32
    return %arg0, %c0_i32 : i32, i32
  }
  func.func @transform_1(%arg0: i32) -> (i32, i32) {
    %c0_i32 = arith.constant 0 : i32
    %c0_i32_0 = arith.constant 0 : i32
    %c0_i32_1 = arith.constant 0 : i32
    return %c0_i32, %c0_i32_0 : i32, i32
  }
  func.func @transform_2(%arg0: i32) -> (i32, i32) {
    %c0_i32 = arith.constant 0 : i32
    %c0_i32_0 = arith.constant 0 : i32
    %c0_i32_1 = arith.constant 0 : i32
    return %c0_i32, %c0_i32_0 : i32, i32
  }
  func.func @transform_3(%arg0: i32) -> (i32, i32) {
    %c0_i32 = arith.constant 0 : i32
    %c0_i32_0 = arith.constant 0 : i32
    %c0_i32_1 = arith.constant 0 : i32
    return %c0_i32, %c0_i32_0 : i32, i32
  }
  func.func @transform_4(%arg0: i32) -> (i32, i32) {
    %c0_i32 = arith.constant 0 : i32
    %c0_i32_0 = arith.constant 0 : i32
    %c0_i32_1 = arith.constant 0 : i32
    return %c0_i32, %c0_i32_0 : i32, i32
  }
  func.func @transform_5(%arg0: i32) -> (i32, i32) {
    %c0_i32 = arith.constant 0 : i32
    %c0_i32_0 = arith.constant 0 : i32
    %c0_i32_1 = arith.constant 0 : i32
    return %c0_i32, %c0_i32_0 : i32, i32
  }
  func.func @transform_6(%arg0: i32) -> (i32, i32) {
    %c0_i32 = arith.constant 0 : i32
    %c0_i32_0 = arith.constant 0 : i32
    %c0_i32_1 = arith.constant 0 : i32
    return %c0_i32, %c0_i32_0 : i32, i32
  }
  func.func @transform_7(%arg0: i32) -> (i32, i32) {
    %c0_i32 = arith.constant 0 : i32
    %c0_i32_0 = arith.constant 0 : i32
    return %arg0, %c0_i32 : i32, i32
  }
}

</mosaic_0001>

<bundles_post_ra>
// kernel: tpu_custom_call.1
= control target key start
LH: loop header
LB: loop body
LE: loop exit
PB: predicated region body
PF: predicated region fallthrough
CT: control target
= control target key end

     0   :  { %v1648_v0 = vmov 0.0   ;;  %vm1649_vm0 = vmmov 0   ;;  %vm107_vm1 = vcmask 261120   ;;  %vm1137_vm2 = vcmask 60416   ;;  %s2305_s1 = inlined_call_operand.vmem [shape: bf16[32,128], index: 1, kind: input, shape index: {}]   ;;  %s2306_s0 = inlined_call_operand.vmem [shape: f32[300,32], index: 0, kind: input, shape index: {}]   ;;  %s2307_s3 = inlined_call_operand.vmem [shape: bf16[128,32], index: 3, kind: input, shape index: {}]   ;;  %s2308_s2 = inlined_call_operand.vmem [shape: f32[1,128], index: 2, kind: input, shape index: {}]   ;;  %s2309_s5 = inlined_call_operand.vmem [shape: bf16[32,8], index: 5, kind: input, shape index: {}]   ;;  %s2310_s4 = inlined_call_operand.vmem [shape: f32[1,32], index: 4, kind: input, shape index: {}]   ;;  %s2311_s6 = inlined_call_operand.vmem [shape: f32[1,8], index: 6, kind: input, shape index: {}]   ;;  %s2312_s7 = inlined_call_operand.vmem [shape: bf16[300,8], index: 7, kind: output, shape index: {}]  }
   0x1   :  { %1378 = vmatprep.subr.bf16.mxu0 %v1648_v0  ;;  %v1636_v1 = vld [vmem:[%s2305_s1] sm:$0xff]   ;;  %1382 = vmatprep.mubr.msk.bf16.mxu0 %vm1649_vm0, %v1648_v0  ;;  %v1637_v2 = vld [vmem:[%s2305_s1 + $0x8] sm:$0xff]   ;;  %v29_v8 = vld [vmem:[%s2306_s0 + $0x10] sm:$0xff] }
   0x2   :  { %1630 = vmatprep.subr.bf16.mxu1 %v1648_v0  ;;  %1422 = vmatprep.mubr.msk.bf16.mxu1 %vm1649_vm0, %v1648_v0  ;;  %v27_v3 = vld [vmem:[%s2306_s0] sm:$0xff]  ;;  %v28_v4 = vld [vmem:[%s2306_s0 + $0x8] sm:$0xff]  ;;  %v30_v9 = vld [vmem:[%s2306_s0 + $0x18] sm:$0xff] }
   0x3   :  { %1379 = vmatpush3.bf16.msra.mxu0 %v1636_v1  ;;  %1632 = vmatpush3.bf16.msra.mxu1 %v1636_v1  ;;  %v65_v5 = vpack.c.bf16 %v28_v4, %v27_v3  ;;  %v47_v6 = vld [vmem:[%s2306_s0 + $0xa0] sm:$0xff]  ;;  %v48_v7 = vld [vmem:[%s2306_s0 + $0xa8] sm:$0xff]  ;;  %v66_v11 = vpack.c.bf16 %v30_v9, %v29_v8  ;;  %v49_v12 = vld [vmem:[%s2306_s0 + $0xb0] sm:$0xff] }
   0x4   :  { %1380 = vmatprep.subr.bf16.mxu0 %v1648_v0  ;;  %1631 = vmatprep.subr.bf16.mxu1 %v1648_v0  ;;  %v75_v10 = vpack.c.bf16 %v48_v7, %v47_v6  ;;  %v50_v13 = vld [vmem:[%s2306_s0 + $0xb8] sm:$0xff]  ;;  %v1638_v14 = vld [vmem:[%s2307_s3] sm:$0xff]   ;;  %v1639_v17 = vld [vmem:[%s2307_s3 + $0x8] sm:$0xff]  }
   0x5   :  { %v31_v15 = vld [vmem:[%s2306_s0 + $0x20] sm:$0xff]  ;;  %v76_v16 = vpack.c.bf16 %v50_v13, %v49_v12  ;;  %v32_v18 = vld [vmem:[%s2306_s0 + $0x28] sm:$0xff]  ;;  %v1640_v22 = vld [vmem:[%s2307_s3 + $0x10] sm:$0xff]  }
   0x6   :  { %v51_v19 = vld [vmem:[%s2306_s0 + $0xc0] sm:$0xff]  ;;  %v67_v20 = vpack.c.bf16 %v32_v18, %v31_v15  ;;  %v52_v21 = vld [vmem:[%s2306_s0 + $0xc8] sm:$0xff]  ;;  %v1641_v24 = vld [vmem:[%s2307_s3 + $0x18] sm:$0xff]  }
   0x7   :  { %1381 = vmatpush3.bf16.msra.mxu0 %v1637_v2  ;;  %1633 = vmatpush3.bf16.msra.mxu1 %v1637_v2  ;;  %v77_v23 = vpack.c.bf16 %v52_v21, %v51_v19  ;;  %v33_v25 = vld [vmem:[%s2306_s0 + $0x30] sm:$0xff]  ;;  %v34_v26 = vld [vmem:[%s2306_s0 + $0x38] sm:$0xff]  ;;  %v1642_v30 = vld [vmem:[%s2307_s3 + $0x20] sm:$0xff]  }
   0x8   :  { %1458 = vmatprep.subr.bf16.mxu1 %v1648_v0  ;;  %1550 = vmatprep.subr.bf16.mxu0 %v1648_v0  ;;  %v68_v27 = vpack.c.bf16 %v34_v26, %v33_v25  ;;  %v53_v28 = vld [vmem:[%s2306_s0 + $0xd0] sm:$0xff]  ;;  %v54_v29 = vld [vmem:[%s2306_s0 + $0xd8] sm:$0xff]  ;;  %v1643_v32 = vld [vmem:[%s2307_s3 + $0x28] sm:$0xff]  }
   0x9   :  { %v78_v31 = vpack.c.bf16 %v54_v29, %v53_v28  ;;  %v35_v33 = vld [vmem:[%s2306_s0 + $0x40] sm:$0xff]  ;;  %v36_v34 = vld [vmem:[%s2306_s0 + $0x48] sm:$0xff]  ;;  %v1644_v38 = vld [vmem:[%s2307_s3 + $0x30] sm:$0xff]  }
   0xa   :  { %1383 = vmatmul.mubr.msk.bf16.vlgmr.msra.gmra.mrb[0].mxu0 %vm107_vm1, %v65_v5  ;;  %1423 = vmatmul.mubr.msk.bf16.vlgmr.msra.gmra.mrb[0].mxu1 %vm107_vm1, %v75_v10  ;;  %v69_v35 = vpack.c.bf16 %v36_v34, %v35_v33  ;;  %v55_v36 = vld [vmem:[%s2306_s0 + $0xe0] sm:$0xff]  ;;  %v56_v37 = vld [vmem:[%s2306_s0 + $0xe8] sm:$0xff]  ;;  %v37_v40 = vld [vmem:[%s2306_s0 + $0x50] sm:$0xff] }
   0xb   :  { %1386 = vmatprep.mubr.msk.bf16.mxu0 %vm1649_vm0, %v1648_v0  ;;  %1426 = vmatprep.mubr.msk.bf16.mxu1 %vm1649_vm0, %v1648_v0  ;;  %v79_v39 = vpack.c.bf16 %v56_v37, %v55_v36  ;;  %v38_v41 = vld [vmem:[%s2306_s0 + $0x58] sm:$0xff]  ;;  %v57_v43 = vld [vmem:[%s2306_s0 + $0xf0] sm:$0xff]  ;;  %v39_v46 = vld [vmem:[%s2306_s0 + $0x60] sm:$0xff] }
   0xc   :  { %1459 = vmatpush3.bf16.msra.mxu1 %v1638_v14  ;;  %v70_v42 = vpack.c.bf16 %v38_v41, %v37_v40  ;;  %v58_v44 = vld [vmem:[%s2306_s0 + $0xf8] sm:$0xff]  ;;  %v40_v47 = vld [vmem:[%s2306_s0 + $0x68] sm:$0xff]  ;;  %v59_v49 = vld [vmem:[%s2306_s0 + $0x100] sm:$0xff] }
   0xd   :  { %1460 = vmatprep.subr.bf16.mxu1 %v1648_v0  ;;  %v80_v45 = vpack.c.bf16 %v58_v44, %v57_v43  ;;  %v71_v48 = vpack.c.bf16 %v40_v47, %v39_v46  ;;  %v60_v50 = vld [vmem:[%s2306_s0 + $0x108] sm:$0xff]  ;;  %v41_v52 = vld [vmem:[%s2306_s0 + $0x70] sm:$0xff]  ;;  %v42_v53 = vld [vmem:[%s2306_s0 + $0x78] sm:$0xff] }
   0xe   :  { %v81_v51 = vpack.c.bf16 %v60_v50, %v59_v49  ;;  %v72_v54 = vpack.c.bf16 %v42_v53, %v41_v52  ;;  %v61_v55 = vld [vmem:[%s2306_s0 + $0x110] sm:$0xff]  ;;  %v62_v56 = vld [vmem:[%s2306_s0 + $0x118] sm:$0xff]  ;;  %v43_v58 = vld [vmem:[%s2306_s0 + $0x80] sm:$0xff] }
   0xf   :  { %v82_v57 = vpack.c.bf16 %v62_v56, %v61_v55  ;;  %v44_v59 = vld [vmem:[%s2306_s0 + $0x88] sm:$0xff]  ;;  %v63_v61 = vld [vmem:[%s2306_s0 + $0x120] sm:$0xff]  ;;  %v45_v1 = vld [vmem:[%s2306_s0 + $0x90] sm:$0xff] }
  0x10   :  { %1461 = vmatpush3.bf16.msra.mxu1 %v1639_v17  ;;  %v73_v60 = vpack.c.bf16 %v44_v59, %v43_v58  ;;  %v64_v62 = vld [vmem:[%s2306_s0 + $0x128] sm:$0xff]  ;;  %v46_v2 = vld [vmem:[%s2306_s0 + $0x98] sm:$0xff]  ;;  %v1911_v5 = vld [vmem:[%s2308_s2] ss:$0 sm:$0xff] }
  0x11   :  { %1462 = vmatprep.subr.bf16.mxu1 %v1648_v0  ;;  %v83_v63 = vpack.c.bf16 %v64_v62, %v63_v61  ;;  %v74_v3 = vpack.c.bf16 %v46_v2, %v45_v1  ;;  %v1645_v4 = vld [vmem:[%s2307_s3 + $0x38] sm:$0xff]   ;;  %v1646_v46 = vld [vmem:[%s2309_s5] sm:$0xff]  }
  0x12   :  { %1387 = vmatmul.mubr.msk.bf16.gmra.mrb[4].mxu0 %vm107_vm1, %v66_v11  ;;  %1427 = vmatmul.mubr.msk.bf16.gmra.mrb[4].mxu1 %vm107_vm1, %v76_v16 }
  0x13   :  { %1390 = vmatprep.mubr.msk.bf16.mxu0 %vm1649_vm0, %v1648_v0  ;;  %1430 = vmatprep.mubr.msk.bf16.mxu1 %vm1649_vm0, %v1648_v0 }
  0x14   :  { %1463 = vmatpush3.bf16.msra.mxu1 %v1640_v22  ;;  %1551 = vmatpush3.bf16.msra.mxu0 %v1646_v46 }
  0x15   :  { %1464 = vmatprep.subr.bf16.mxu1 %v1648_v0  ;;  %1552 = vmatprep.subr.bf16.mxu0 %v1648_v0 }
  0x18   :  { %1465 = vmatpush3.bf16.msra.mxu1 %v1641_v24 }
  0x19   :  { %1466 = vmatprep.subr.bf16.mxu1 %v1648_v0 }
  0x1a   :  { %1391 = vmatmul.mubr.msk.bf16.gmra.mrb[8].mxu0 %vm107_vm1, %v67_v20  ;;  %1431 = vmatmul.mubr.msk.bf16.gmra.mrb[8].mxu1 %vm107_vm1, %v77_v23 }
  0x1b   :  { %1394 = vmatprep.mubr.msk.bf16.mxu0 %vm1649_vm0, %v1648_v0  ;;  %1434 = vmatprep.mubr.msk.bf16.mxu1 %vm1649_vm0, %v1648_v0 }
  0x1c   :  { %1467 = vmatpush3.bf16.msra.mxu1 %v1642_v30 }
  0x1d   :  { %1468 = vmatprep.subr.bf16.mxu1 %v1648_v0 }
  0x20   :  { %1469 = vmatpush3.bf16.msra.mxu1 %v1643_v32 }
  0x21   :  { %1470 = vmatprep.subr.bf16.mxu1 %v1648_v0 }
  0x22   :  { %1395 = vmatmul.mubr.msk.bf16.gmra.mrb[12].mxu0 %vm107_vm1, %v68_v27  ;;  %1435 = vmatmul.mubr.msk.bf16.gmra.mrb[12].mxu1 %vm107_vm1, %v78_v31 }
  0x23   :  { %1398 = vmatprep.mubr.msk.bf16.mxu0 %vm1649_vm0, %v1648_v0  ;;  %1438 = vmatprep.mubr.msk.bf16.mxu1 %vm1649_vm0, %v1648_v0 }
  0x24   :  { %1471 = vmatpush3.bf16.msra.mxu1 %v1644_v38 }
  0x25   :  { %1472 = vmatprep.subr.bf16.mxu1 %v1648_v0 }
  0x28   :  { %1473 = vmatpush3.bf16.msra.mxu1 %v1645_v4 }
  0x2a   :  { %1399 = vmatmul.mubr.msk.bf16.gmra.mrb[16].mxu0 %vm107_vm1, %v69_v35  ;;  %1439 = vmatmul.mubr.msk.bf16.gmra.mrb[16].mxu1 %vm107_vm1, %v79_v39 }
  0x2b   :  { %1402 = vmatprep.mubr.msk.bf16.mxu0 %vm1649_vm0, %v1648_v0  ;;  %1442 = vmatprep.mubr.msk.bf16.mxu1 %vm1649_vm0, %v1648_v0 }
  0x32   :  { %1403 = vmatmul.mubr.msk.bf16.gmra.mrb[20].mxu0 %vm107_vm1, %v70_v42  ;;  %1443 = vmatmul.mubr.msk.bf16.gmra.mrb[20].mxu1 %vm107_vm1, %v80_v45 }
  0x33   :  { %1406 = vmatprep.mubr.msk.bf16.mxu0 %vm1649_vm0, %v1648_v0  ;;  %1446 = vmatprep.mubr.msk.bf16.mxu1 %vm1649_vm0, %v1648_v0 }
  0x3a   :  { %1407 = vmatmul.mubr.msk.bf16.gmra.mrb[24].mxu0 %vm107_vm1, %v71_v48  ;;  %1447 = vmatmul.mubr.msk.bf16.gmra.mrb[24].mxu1 %vm107_vm1, %v81_v51 }
  0x3b   :  { %1410 = vmatprep.mubr.msk.bf16.mxu0 %vm1649_vm0, %v1648_v0  ;;  %1450 = vmatprep.mubr.msk.bf16.mxu1 %vm1649_vm0, %v1648_v0 }
  0x42   :  { %1411 = vmatmul.mubr.msk.bf16.gmra.mrb[28].mxu0 %vm107_vm1, %v72_v54  ;;  %1451 = vmatmul.mubr.msk.bf16.gmra.mrb[28].mxu1 %vm107_vm1, %v82_v57 }
  0x43   :  { %1414 = vmatprep.mubr.msk.bf16.mxu0 %vm1649_vm0, %v1648_v0  ;;  %1454 = vmatprep.mubr.msk.bf16.mxu1 %vm1649_vm0, %v1648_v0 }
  0x4a   :  { %1415 = vmatmul.mubr.msk.bf16.gmra.mrb[32].mxu0 %vm107_vm1, %v73_v60  ;;  %1455 = vmatmul.mubr.msk.bf16.gmra.mrb[32].mxu1 %vm107_vm1, %v83_v63  ;;  %v1647_v63 = vld [vmem:[%s2309_s5 + $0x8] sm:$0xff]  }
  0x4b   :  { %1418 = vmatprep.mubr.msk.bf16.mxu0 %vm1649_vm0, %v1648_v0  ;;  %1474 = vmatprep.mubr.msk.bf16.mxu1 %vm1649_vm0, %v1648_v0 }
  0x4c   :  { %1553 = vmatpush3.bf16.msra.mxu0 %v1647_v63 }
  0x52   :  { %1419 = vmatmul.mubr.msk.bf16.gmra.mrb[36].mxu0 %vm107_vm1, %v74_v3 }
  0x53   :  { %1554 = vmatprep.mubr.msk.bf16.mxu0 %vm1649_vm0, %v1648_v0 }
  0xdd   :  { %v199_v6 = vpop.f32.mrb[0].mxu0  ;;  %v279_v12 = vpop.f32.mrb[0].mxu1 }
  0xde   :  { %v200_v7 = vadd.f32 %v1911_v5, %v199_v6  ;;  %v1384_v8 = vpop.f32.mrb[1].mxu0  ;;  %v280_v13 = vadd.f32 %v1911_v5, %v279_v12  ;;  %v1424_v14 = vpop.f32.mrb[1].mxu1 }
  0xdf   :  { %v202_v9 = vpop.f32.mrb[2].mxu0  ;;  %v282_v17 = vpop.f32.mrb[2].mxu1 }
  0xe0   :  { %v203_v10 = vadd.f32 %v1911_v5, %v202_v9  ;;  %v1385_v11 = vpop.f32.mrb[3].mxu0  ;;  %v350_v15 = vmax.f32 %v200_v7, 0.0  ;;  %v370_v18 = vmax.f32 %v280_v13, 0.0  ;;  %v283_v19 = vadd.f32 %v1911_v5, %v282_v17  ;;  %v1425_v20 = vpop.f32.mrb[3].mxu1 }
  0xe2   :  { %v351_v16 = vmax.f32 %v203_v10, 0.0  ;;  %v371_v23 = vmax.f32 %v283_v19, 0.0 }
  0xe4   :  { %v388_v21 = vpack.c.bf16 %v351_v16, %v350_v15  ;;  %v1920_v27 = vpack.c.bf16 %v371_v23, %v370_v18 }
  0xe5   :  { %v207_v22 = vpop.f32.mrb[4].mxu0  ;;  %v287_v30 = vpop.f32.mrb[4].mxu1 }
  0xe6   :  { %v208_v24 = vadd.f32 %v1911_v5, %v207_v22  ;;  %v1388_v25 = vpop.f32.mrb[5].mxu0  ;;  %1475 = vmatmul.mubr.bf16.vlgmr.msra.gmra.mrb[36].mxu1 %v388_v21  ;;  %v288_v31 = vadd.f32 %v1911_v5, %v287_v30  ;;  %v1428_v32 = vpop.f32.mrb[5].mxu1 }
  0xe7   :  { %v210_v26 = vpop.f32.mrb[6].mxu0  ;;  %1478 = vmatprep.mubr.msk.bf16.mxu1 %vm1649_vm0, %v1648_v0  ;;  %v290_v35 = vpop.f32.mrb[6].mxu1 }
  0xe8   :  { %v211_v28 = vadd.f32 %v1911_v5, %v210_v26  ;;  %v1389_v29 = vpop.f32.mrb[7].mxu0  ;;  %v352_v33 = vmax.f32 %v208_v24, 0.0  ;;  %v372_v36 = vmax.f32 %v288_v31, 0.0  ;;  %v291_v37 = vadd.f32 %v1911_v5, %v290_v35  ;;  %v1429_v38 = vpop.f32.mrb[7].mxu1 }
  0xea   :  { %v353_v34 = vmax.f32 %v211_v28, 0.0  ;;  %v373_v41 = vmax.f32 %v291_v37, 0.0 }
  0xec   :  { %v389_v39 = vpack.c.bf16 %v353_v34, %v352_v33  ;;  %v1928_v45 = vpack.c.bf16 %v373_v41, %v372_v36 }
  0xed   :  { %v215_v40 = vpop.f32.mrb[8].mxu0  ;;  %v295_v49 = vpop.f32.mrb[8].mxu1 }
  0xee   :  { %v216_v42 = vadd.f32 %v1911_v5, %v215_v40  ;;  %v1392_v43 = vpop.f32.mrb[9].mxu0  ;;  %1479 = vmatmul.mubr.bf16.gmra.mrb[40].mxu1 %v389_v39  ;;  %v296_v50 = vadd.f32 %v1911_v5, %v295_v49  ;;  %v1432_v51 = vpop.f32.mrb[9].mxu1 }
  0xef   :  { %v218_v44 = vpop.f32.mrb[10].mxu0  ;;  %1482 = vmatprep.mubr.msk.bf16.mxu1 %vm1649_vm0, %v1648_v0  ;;  %v298_v54 = vpop.f32.mrb[10].mxu1 }
  0xf0   :  { %v219_v47 = vadd.f32 %v1911_v5, %v218_v44  ;;  %v1393_v48 = vpop.f32.mrb[11].mxu0  ;;  %v354_v52 = vmax.f32 %v216_v42, 0.0  ;;  %v374_v55 = vmax.f32 %v296_v50, 0.0  ;;  %v299_v56 = vadd.f32 %v1911_v5, %v298_v54  ;;  %v1433_v57 = vpop.f32.mrb[11].mxu1 }
  0xf2   :  { %v355_v53 = vmax.f32 %v219_v47, 0.0  ;;  %v375_v60 = vmax.f32 %v299_v56, 0.0 }
  0xf4   :  { %v390_v58 = vpack.c.bf16 %v355_v53, %v354_v52  ;;  %v1943_v2 = vpack.c.bf16 %v375_v60, %v374_v55 }
  0xf5   :  { %v223_v59 = vpop.f32.mrb[12].mxu0  ;;  %v303_v6 = vpop.f32.mrb[12].mxu1 }
  0xf6   :  { %v224_v61 = vadd.f32 %v1911_v5, %v223_v59  ;;  %v1396_v62 = vpop.f32.mrb[13].mxu0  ;;  %1483 = vmatmul.mubr.bf16.gmra.mrb[44].mxu1 %v390_v58  ;;  %v304_v7 = vadd.f32 %v1911_v5, %v303_v6  ;;  %v1436_v8 = vpop.f32.mrb[13].mxu1 }
  0xf7   :  { %v226_v1 = vpop.f32.mrb[14].mxu0  ;;  %1486 = vmatprep.mubr.msk.bf16.mxu1 %vm1649_vm0, %v1648_v0  ;;  %v306_v11 = vpop.f32.mrb[14].mxu1 }
  0xf8   :  { %v227_v3 = vadd.f32 %v1911_v5, %v226_v1  ;;  %v1397_v4 = vpop.f32.mrb[15].mxu0  ;;  %v356_v9 = vmax.f32 %v224_v61, 0.0  ;;  %v376_v12 = vmax.f32 %v304_v7, 0.0  ;;  %v307_v13 = vadd.f32 %v1911_v5, %v306_v11  ;;  %v1437_v14 = vpop.f32.mrb[15].mxu1 }
  0xfa   :  { %v357_v10 = vmax.f32 %v227_v3, 0.0  ;;  %v377_v17 = vmax.f32 %v307_v13, 0.0 }
  0xfc   :  { %v391_v15 = vpack.c.bf16 %v357_v10, %v356_v9  ;;  %v1951_v21 = vpack.c.bf16 %v377_v17, %v376_v12 }
  0xfd   :  { %v231_v16 = vpop.f32.mrb[16].mxu0  ;;  %v311_v24 = vpop.f32.mrb[16].mxu1 }
  0xfe   :  { %v232_v18 = vadd.f32 %v1911_v5, %v231_v16  ;;  %v1400_v19 = vpop.f32.mrb[17].mxu0  ;;  %1487 = vmatmul.mubr.bf16.gmra.mrb[48].mxu1 %v391_v15  ;;  %v312_v25 = vadd.f32 %v1911_v5, %v311_v24  ;;  %v1440_v26 = vpop.f32.mrb[17].mxu1 }
  0xff   :  { %v234_v20 = vpop.f32.mrb[18].mxu0  ;;  %1490 = vmatprep.mubr.msk.bf16.mxu1 %vm1649_vm0, %v1648_v0  ;;  %v314_v30 = vpop.f32.mrb[18].mxu1 }
 0x100   :  { %v235_v22 = vadd.f32 %v1911_v5, %v234_v20  ;;  %v1401_v23 = vpop.f32.mrb[19].mxu0  ;;  %v358_v28 = vmax.f32 %v232_v18, 0.0  ;;  %v378_v31 = vmax.f32 %v312_v25, 0.0  ;;  %v315_v32 = vadd.f32 %v1911_v5, %v314_v30  ;;  %v1441_v33 = vpop.f32.mrb[19].mxu1 }
 0x102   :  { %v359_v29 = vmax.f32 %v235_v22, 0.0  ;;  %v379_v36 = vmax.f32 %v315_v32, 0.0 }
 0x104   :  { %v392_v34 = vpack.c.bf16 %v359_v29, %v358_v28  ;;  %v1959_v40 = vpack.c.bf16 %v379_v36, %v378_v31 }
 0x105   :  { %v239_v35 = vpop.f32.mrb[20].mxu0  ;;  %v319_v43 = vpop.f32.mrb[20].mxu1 }
 0x106   :  { %v240_v37 = vadd.f32 %v1911_v5, %v239_v35  ;;  %v1404_v38 = vpop.f32.mrb[21].mxu0  ;;  %1491 = vmatmul.mubr.bf16.gmra.mrb[52].mxu1 %v392_v34  ;;  %v320_v44 = vadd.f32 %v1911_v5, %v319_v43  ;;  %v1444_v46 = vpop.f32.mrb[21].mxu1 }
 0x107   :  { %v242_v39 = vpop.f32.mrb[22].mxu0  ;;  %1494 = vmatprep.mubr.msk.bf16.mxu1 %vm1649_vm0, %v1648_v0  ;;  %v322_v49 = vpop.f32.mrb[22].mxu1 }
 0x108   :  { %v243_v41 = vadd.f32 %v1911_v5, %v242_v39  ;;  %v1405_v42 = vpop.f32.mrb[23].mxu0  ;;  %v360_v47 = vmax.f32 %v240_v37, 0.0  ;;  %v380_v50 = vmax.f32 %v320_v44, 0.0  ;;  %v323_v51 = vadd.f32 %v1911_v5, %v322_v49  ;;  %v1445_v52 = vpop.f32.mrb[23].mxu1 }
 0x10a   :  { %v361_v48 = vmax.f32 %v243_v41, 0.0  ;;  %v381_v55 = vmax.f32 %v323_v51, 0.0 }
 0x10c   :  { %v393_v53 = vpack.c.bf16 %v361_v48, %v360_v47  ;;  %v1967_v59 = vpack.c.bf16 %v381_v55, %v380_v50 }
 0x10d   :  { %v247_v54 = vpop.f32.mrb[24].mxu0  ;;  %v327_v62 = vpop.f32.mrb[24].mxu1 }
 0x10e   :  { %v248_v56 = vadd.f32 %v1911_v5, %v247_v54  ;;  %v1408_v57 = vpop.f32.mrb[25].mxu0  ;;  %1495 = vmatmul.mubr.bf16.gmra.mrb[56].mxu1 %v393_v53  ;;  %v328_v63 = vadd.f32 %v1911_v5, %v327_v62  ;;  %v1448_v1 = vpop.f32.mrb[25].mxu1 }
 0x10f   :  { %v250_v58 = vpop.f32.mrb[26].mxu0  ;;  %1498 = vmatprep.mubr.msk.bf16.mxu1 %vm1649_vm0, %v1648_v0  ;;  %v330_v6 = vpop.f32.mrb[26].mxu1 }
 0x110   :  { %v251_v60 = vadd.f32 %v1911_v5, %v250_v58  ;;  %v1409_v61 = vpop.f32.mrb[27].mxu0  ;;  %v362_v3 = vmax.f32 %v248_v56, 0.0  ;;  %v382_v7 = vmax.f32 %v328_v63, 0.0  ;;  %v331_v8 = vadd.f32 %v1911_v5, %v330_v6  ;;  %v1449_v9 = vpop.f32.mrb[27].mxu1 }
 0x112   :  { %v363_v4 = vmax.f32 %v251_v60, 0.0  ;;  %v383_v12 = vmax.f32 %v331_v8, 0.0 }
 0x114   :  { %v394_v10 = vpack.c.bf16 %v363_v4, %v362_v3  ;;  %v404_v16 = vpack.c.bf16 %v383_v12, %v382_v7 }
 0x115   :  { %v255_v11 = vpop.f32.mrb[28].mxu0  ;;  %v335_v19 = vpop.f32.mrb[28].mxu1 }
 0x116   :  { %v256_v13 = vadd.f32 %v1911_v5, %v255_v11  ;;  %v1412_v14 = vpop.f32.mrb[29].mxu0  ;;  %1499 = vmatmul.mubr.bf16.gmra.mrb[60].mxu1 %v394_v10  ;;  %v336_v20 = vadd.f32 %v1911_v5, %v335_v19  ;;  %v1452_v22 = vpop.f32.mrb[29].mxu1 }
 0x117   :  { %v258_v15 = vpop.f32.mrb[30].mxu0  ;;  %1502 = vmatprep.mubr.msk.bf16.mxu1 %vm1649_vm0, %v1648_v0  ;;  %v338_v25 = vpop.f32.mrb[30].mxu1 }
 0x118   :  { %v259_v17 = vadd.f32 %v1911_v5, %v258_v15  ;;  %v1413_v18 = vpop.f32.mrb[31].mxu0  ;;  %v364_v23 = vmax.f32 %v256_v13, 0.0  ;;  %v384_v26 = vmax.f32 %v336_v20, 0.0  ;;  %v339_v28 = vadd.f32 %v1911_v5, %v338_v25  ;;  %v1453_v29 = vpop.f32.mrb[31].mxu1 }
 0x11a   :  { %v365_v24 = vmax.f32 %v259_v17, 0.0  ;;  %v385_v32 = vmax.f32 %v339_v28, 0.0 }
 0x11c   :  { %v395_v30 = vpack.c.bf16 %v365_v24, %v364_v23  ;;  %v405_v36 = vpack.c.bf16 %v385_v32, %v384_v26 }
 0x11d   :  { %v263_v31 = vpop.f32.mrb[32].mxu0  ;;  %v343_v39 = vpop.f32.mrb[32].mxu1 }
 0x11e   :  { %v264_v33 = vadd.f32 %v1911_v5, %v263_v31  ;;  %v1416_v34 = vpop.f32.mrb[33].mxu0  ;;  %1503 = vmatmul.mubr.bf16.gmra.mrb[64].mxu1 %v395_v30  ;;  %v344_v41 = vadd.f32 %v1911_v5, %v343_v39  ;;  %v1456_v42 = vpop.f32.mrb[33].mxu1 }
 0x11f   :  { %v266_v35 = vpop.f32.mrb[34].mxu0  ;;  %1506 = vmatprep.mubr.msk.bf16.mxu1 %vm1649_vm0, %v1648_v0  ;;  %v346_v46 = vpop.f32.mrb[34].mxu1 }
 0x120   :  { %v267_v37 = vadd.f32 %v1911_v5, %v266_v35  ;;  %v1417_v38 = vpop.f32.mrb[35].mxu0  ;;  %v366_v43 = vmax.f32 %v264_v33, 0.0  ;;  %v386_v47 = vmax.f32 %v344_v41, 0.0  ;;  %v347_v48 = vadd.f32 %v1911_v5, %v346_v46  ;;  %v1457_v49 = vpop.f32.mrb[35].mxu1 }
 0x122   :  { %v367_v44 = vmax.f32 %v267_v37, 0.0  ;;  %v387_v52 = vmax.f32 %v347_v48, 0.0 }
 0x124   :  { %v396_v50 = vpack.c.bf16 %v367_v44, %v366_v43  ;;  %v406_v56 = vpack.c.bf16 %v387_v52, %v386_v47 }
 0x125   :  { %v271_v51 = vpop.f32.mrb[36].mxu0 }
 0x126   :  { %v272_v53 = vadd.f32 %v1911_v5, %v271_v51  ;;  %v1420_v54 = vpop.f32.mrb[37].mxu0  ;;  %1507 = vmatmul.mubr.bf16.gmra.mrb[68].mxu1 %v396_v50 }
 0x127   :  { %v274_v55 = vpop.f32.mrb[38].mxu0  ;;  %1510 = vmatprep.mubr.msk.bf16.mxu1 %vm1649_vm0, %v1648_v0 }
 0x128   :  { %v275_v57 = vadd.f32 %v1911_v5, %v274_v55  ;;  %v1421_v58 = vpop.f32.mrb[39].mxu0  ;;  %v368_v60 = vmax.f32 %v272_v53, 0.0  ;;  %v2015_v5 = vld [vmem:[%s2310_s4] ss:$0 sm:$0xff] }
 0x12a   :  { %v369_v61 = vmax.f32 %v275_v57, 0.0 }
 0x12c   :  { %v397_v62 = vpack.c.bf16 %v369_v61, %v368_v60 }
 0x12e   :  { %1511 = vmatmul.mubr.bf16.gmra.mrb[72].mxu1 %v397_v62 }
 0x12f   :  { %1514 = vmatprep.mubr.msk.bf16.mxu1 %vm1649_vm0, %v1648_v0 }
 0x136   :  { %1515 = vmatmul.mubr.bf16.gmra.mrb[76].mxu1 %v1920_v27 }
 0x137   :  { %1518 = vmatprep.mubr.msk.bf16.mxu1 %vm1649_vm0, %v1648_v0 }
 0x13e   :  { %1519 = vmatmul.mubr.bf16.gmra.mrb[80].mxu1 %v1928_v45 }
 0x13f   :  { %1522 = vmatprep.mubr.msk.bf16.mxu1 %vm1649_vm0, %v1648_v0 }
 0x146   :  { %1523 = vmatmul.mubr.bf16.gmra.mrb[84].mxu1 %v1943_v2 }
 0x147   :  { %1526 = vmatprep.mubr.msk.bf16.mxu1 %vm1649_vm0, %v1648_v0 }
 0x14e   :  { %1527 = vmatmul.mubr.bf16.gmra.mrb[88].mxu1 %v1951_v21 }
 0x14f   :  { %1530 = vmatprep.mubr.msk.bf16.mxu1 %vm1649_vm0, %v1648_v0 }
 0x156   :  { %1531 = vmatmul.mubr.bf16.gmra.mrb[92].mxu1 %v1959_v40 }
 0x157   :  { %1534 = vmatprep.mubr.msk.bf16.mxu1 %vm1649_vm0, %v1648_v0 }
 0x15e   :  { %1535 = vmatmul.mubr.bf16.gmra.mrb[96].mxu1 %v1967_v59 }
 0x15f   :  { %1538 = vmatprep.mubr.msk.bf16.mxu1 %vm1649_vm0, %v1648_v0 }
 0x166   :  { %1539 = vmatmul.mubr.bf16.gmra.mrb[100].mxu1 %v404_v16 }
 0x167   :  { %1542 = vmatprep.mubr.msk.bf16.mxu1 %vm1649_vm0, %v1648_v0 }
 0x16e   :  { %1543 = vmatmul.mubr.bf16.gmra.mrb[104].mxu1 %v405_v36 }
 0x16f   :  { %1546 = vmatprep.mubr.msk.bf16.mxu1 %vm1649_vm0, %v1648_v0 }
 0x176   :  { %1547 = vmatmul.mubr.bf16.gmra.mrb[108].mxu1 %v406_v56 }
 0x1b9   :  { %v512_v27 = vpop.f32.mrb[36].mxu1 }
 0x1ba   :  { %v513_v45 = vadd.f32 %v2015_v5, %v512_v27  ;;  %v1476_v2 = vpop.f32.mrb[37].mxu1 }
 0x1bb   :  { %v515_v21 = vpop.f32.mrb[38].mxu1 }
 0x1bc   :  { %v516_v40 = vadd.f32 %v2015_v5, %v515_v21  ;;  %v1477_v59 = vpop.f32.mrb[39].mxu1  ;;  %v663_v63 = vmax.f32 %v513_v45, 0.0 }
 0x1be   :  { %v664_v1 = vmax.f32 %v516_v40, 0.0 }
 0x1c0   :  { %v701_v3 = vpack.c.bf16 %v664_v1, %v663_v63 }
 0x1c1   :  { %v520_v4 = vpop.f32.mrb[40].mxu1 }
 0x1c2   :  { %v521_v6 = vadd.f32 %v2015_v5, %v520_v4  ;;  %v1480_v7 = vpop.f32.mrb[41].mxu1  ;;  %1555 = vmatmul.mubr.msk.bf16.vlgmr.msra.gmra.mrb[40].mxu0 %vm107_vm1, %v701_v3 }
 0x1c3   :  { %v523_v8 = vpop.f32.mrb[42].mxu1  ;;  %1558 = vmatprep.mubr.msk.bf16.mxu0 %vm1649_vm0, %v1648_v0 }
 0x1c4   :  { %v524_v9 = vadd.f32 %v2015_v5, %v523_v8  ;;  %v1481_v10 = vpop.f32.mrb[43].mxu1  ;;  %v665_v11 = vmax.f32 %v521_v6, 0.0 }
 0x1c6   :  { %v666_v12 = vmax.f32 %v524_v9, 0.0 }
 0x1c8   :  { %v702_v13 = vpack.c.bf16 %v666_v12, %v665_v11 }
 0x1c9   :  { %v528_v14 = vpop.f32.mrb[44].mxu1 }
 0x1ca   :  { %v529_v15 = vadd.f32 %v2015_v5, %v528_v14  ;;  %v1484_v16 = vpop.f32.mrb[45].mxu1  ;;  %1559 = vmatmul.mubr.msk.bf16.gmra.mrb[44].mxu0 %vm107_vm1, %v702_v13 }
 0x1cb   :  { %v531_v17 = vpop.f32.mrb[46].mxu1  ;;  %1562 = vmatprep.mubr.msk.bf16.mxu0 %vm1649_vm0, %v1648_v0 }
 0x1cc   :  { %v532_v18 = vadd.f32 %v2015_v5, %v531_v17  ;;  %v1485_v19 = vpop.f32.mrb[47].mxu1  ;;  %v667_v20 = vmax.f32 %v529_v15, 0.0 }
 0x1ce   :  { %v668_v22 = vmax.f32 %v532_v18, 0.0 }
 0x1d0   :  { %v703_v23 = vpack.c.bf16 %v668_v22, %v667_v20 }
 0x1d1   :  { %v536_v24 = vpop.f32.mrb[48].mxu1 }
 0x1d2   :  { %v537_v25 = vadd.f32 %v2015_v5, %v536_v24  ;;  %v1488_v26 = vpop.f32.mrb[49].mxu1  ;;  %1563 = vmatmul.mubr.msk.bf16.gmra.mrb[48].mxu0 %vm107_vm1, %v703_v23 }
 0x1d3   :  { %v539_v28 = vpop.f32.mrb[50].mxu1  ;;  %1566 = vmatprep.mubr.msk.bf16.mxu0 %vm1649_vm0, %v1648_v0 }
 0x1d4   :  { %v540_v29 = vadd.f32 %v2015_v5, %v539_v28  ;;  %v1489_v30 = vpop.f32.mrb[51].mxu1  ;;  %v669_v31 = vmax.f32 %v537_v25, 0.0 }
 0x1d6   :  { %v670_v32 = vmax.f32 %v540_v29, 0.0 }
 0x1d8   :  { %v704_v33 = vpack.c.bf16 %v670_v32, %v669_v31 }
 0x1d9   :  { %v544_v34 = vpop.f32.mrb[52].mxu1 }
 0x1da   :  { %v545_v35 = vadd.f32 %v2015_v5, %v544_v34  ;;  %v1492_v36 = vpop.f32.mrb[53].mxu1  ;;  %1567 = vmatmul.mubr.msk.bf16.gmra.mrb[52].mxu0 %vm107_vm1, %v704_v33 }
 0x1db   :  { %v547_v37 = vpop.f32.mrb[54].mxu1  ;;  %1570 = vmatprep.mubr.msk.bf16.mxu0 %vm1649_vm0, %v1648_v0 }
 0x1dc   :  { %v548_v38 = vadd.f32 %v2015_v5, %v547_v37  ;;  %v1493_v39 = vpop.f32.mrb[55].mxu1  ;;  %v671_v41 = vmax.f32 %v545_v35, 0.0 }
 0x1de   :  { %v672_v42 = vmax.f32 %v548_v38, 0.0 }
 0x1e0   :  { %v705_v43 = vpack.c.bf16 %v672_v42, %v671_v41 }
 0x1e1   :  { %v552_v44 = vpop.f32.mrb[56].mxu1 }
 0x1e2   :  { %v553_v46 = vadd.f32 %v2015_v5, %v552_v44  ;;  %v1496_v47 = vpop.f32.mrb[57].mxu1  ;;  %1571 = vmatmul.mubr.msk.bf16.gmra.mrb[56].mxu0 %vm107_vm1, %v705_v43 }
 0x1e3   :  { %v555_v48 = vpop.f32.mrb[58].mxu1  ;;  %1574 = vmatprep.mubr.msk.bf16.mxu0 %vm1649_vm0, %v1648_v0 }
 0x1e4   :  { %v556_v49 = vadd.f32 %v2015_v5, %v555_v48  ;;  %v1497_v50 = vpop.f32.mrb[59].mxu1  ;;  %v673_v51 = vmax.f32 %v553_v46, 0.0 }
 0x1e6   :  { %v674_v52 = vmax.f32 %v556_v49, 0.0 }
 0x1e8   :  { %v706_v53 = vpack.c.bf16 %v674_v52, %v673_v51 }
 0x1e9   :  { %v560_v54 = vpop.f32.mrb[60].mxu1 }
 0x1ea   :  { %v561_v55 = vadd.f32 %v2015_v5, %v560_v54  ;;  %v1500_v56 = vpop.f32.mrb[61].mxu1  ;;  %1575 = vmatmul.mubr.msk.bf16.gmra.mrb[60].mxu0 %vm107_vm1, %v706_v53 }
 0x1eb   :  { %v563_v57 = vpop.f32.mrb[62].mxu1  ;;  %1578 = vmatprep.mubr.msk.bf16.mxu0 %vm1649_vm0, %v1648_v0 }
 0x1ec   :  { %v564_v58 = vadd.f32 %v2015_v5, %v563_v57  ;;  %v1501_v60 = vpop.f32.mrb[63].mxu1  ;;  %v675_v61 = vmax.f32 %v561_v55, 0.0 }
 0x1ee   :  { %v676_v62 = vmax.f32 %v564_v58, 0.0 }
 0x1f0   :  { %v707_v27 = vpack.c.bf16 %v676_v62, %v675_v61 }
 0x1f1   :  { %v568_v45 = vpop.f32.mrb[64].mxu1 }
 0x1f2   :  { %v569_v2 = vadd.f32 %v2015_v5, %v568_v45  ;;  %v1504_v21 = vpop.f32.mrb[65].mxu1  ;;  %1579 = vmatmul.mubr.msk.bf16.gmra.mrb[64].mxu0 %vm107_vm1, %v707_v27 }
 0x1f3   :  { %v571_v40 = vpop.f32.mrb[66].mxu1  ;;  %1582 = vmatprep.mubr.msk.bf16.mxu0 %vm1649_vm0, %v1648_v0 }
 0x1f4   :  { %v572_v59 = vadd.f32 %v2015_v5, %v571_v40  ;;  %v1505_v63 = vpop.f32.mrb[67].mxu1  ;;  %v677_v1 = vmax.f32 %v569_v2, 0.0 }
 0x1f6   :  { %v678_v3 = vmax.f32 %v572_v59, 0.0 }
 0x1f8   :  { %v708_v4 = vpack.c.bf16 %v678_v3, %v677_v1 }
 0x1f9   :  { %v576_v6 = vpop.f32.mrb[68].mxu1 }
 0x1fa   :  { %v577_v7 = vadd.f32 %v2015_v5, %v576_v6  ;;  %v1508_v8 = vpop.f32.mrb[69].mxu1  ;;  %1583 = vmatmul.mubr.msk.bf16.gmra.mrb[68].mxu0 %vm107_vm1, %v708_v4 }
 0x1fb   :  { %v579_v9 = vpop.f32.mrb[70].mxu1  ;;  %1586 = vmatprep.mubr.msk.bf16.mxu0 %vm1649_vm0, %v1648_v0 }
 0x1fc   :  { %v580_v10 = vadd.f32 %v2015_v5, %v579_v9  ;;  %v1509_v11 = vpop.f32.mrb[71].mxu1  ;;  %v679_v12 = vmax.f32 %v577_v7, 0.0 }
 0x1fe   :  { %v680_v13 = vmax.f32 %v580_v10, 0.0 }
 0x200   :  { %v709_v14 = vpack.c.bf16 %v680_v13, %v679_v12 }
 0x201   :  { %v584_v15 = vpop.f32.mrb[72].mxu1 }
 0x202   :  { %v585_v16 = vadd.f32 %v2015_v5, %v584_v15  ;;  %v1512_v17 = vpop.f32.mrb[73].mxu1  ;;  %1587 = vmatmul.mubr.msk.bf16.gmra.mrb[72].mxu0 %vm107_vm1, %v709_v14 }
 0x203   :  { %v587_v18 = vpop.f32.mrb[74].mxu1  ;;  %1590 = vmatprep.mubr.msk.bf16.mxu0 %vm1649_vm0, %v1648_v0 }
 0x204   :  { %v588_v19 = vadd.f32 %v2015_v5, %v587_v18  ;;  %v1513_v20 = vpop.f32.mrb[75].mxu1  ;;  %v681_v22 = vmax.f32 %v585_v16, 0.0 }
 0x206   :  { %v682_v23 = vmax.f32 %v588_v19, 0.0 }
 0x208   :  { %v710_v24 = vpack.c.bf16 %v682_v23, %v681_v22 }
 0x209   :  { %v592_v25 = vpop.f32.mrb[76].mxu1 }
 0x20a   :  { %v593_v26 = vadd.f32 %v2015_v5, %v592_v25  ;;  %v1516_v28 = vpop.f32.mrb[77].mxu1  ;;  %1591 = vmatmul.mubr.msk.bf16.gmra.mrb[76].mxu0 %vm107_vm1, %v710_v24 }
 0x20b   :  { %v595_v29 = vpop.f32.mrb[78].mxu1  ;;  %1594 = vmatprep.mubr.msk.bf16.mxu0 %vm1649_vm0, %v1648_v0 }
 0x20c   :  { %v596_v30 = vadd.f32 %v2015_v5, %v595_v29  ;;  %v1517_v31 = vpop.f32.mrb[79].mxu1  ;;  %v683_v32 = vmax.f32 %v593_v26, 0.0 }
 0x20e   :  { %v684_v33 = vmax.f32 %v596_v30, 0.0 }
 0x210   :  { %v711_v34 = vpack.c.bf16 %v684_v33, %v683_v32 }
 0x211   :  { %v600_v35 = vpop.f32.mrb[80].mxu1 }
 0x212   :  { %v601_v36 = vadd.f32 %v2015_v5, %v600_v35  ;;  %v1520_v37 = vpop.f32.mrb[81].mxu1  ;;  %1595 = vmatmul.mubr.msk.bf16.gmra.mrb[80].mxu0 %vm107_vm1, %v711_v34 }
 0x213   :  { %v603_v38 = vpop.f32.mrb[82].mxu1  ;;  %1598 = vmatprep.mubr.msk.bf16.mxu0 %vm1649_vm0, %v1648_v0 }
 0x214   :  { %v604_v39 = vadd.f32 %v2015_v5, %v603_v38  ;;  %v1521_v41 = vpop.f32.mrb[83].mxu1  ;;  %v685_v42 = vmax.f32 %v601_v36, 0.0 }
 0x216   :  { %v686_v43 = vmax.f32 %v604_v39, 0.0 }
 0x218   :  { %v712_v44 = vpack.c.bf16 %v686_v43, %v685_v42 }
 0x219   :  { %v608_v46 = vpop.f32.mrb[84].mxu1 }
 0x21a   :  { %v609_v47 = vadd.f32 %v2015_v5, %v608_v46  ;;  %v1524_v48 = vpop.f32.mrb[85].mxu1  ;;  %1599 = vmatmul.mubr.msk.bf16.gmra.mrb[84].mxu0 %vm107_vm1, %v712_v44 }
 0x21b   :  { %v611_v49 = vpop.f32.mrb[86].mxu1  ;;  %1602 = vmatprep.mubr.msk.bf16.mxu0 %vm1649_vm0, %v1648_v0 }
 0x21c   :  { %v612_v50 = vadd.f32 %v2015_v5, %v611_v49  ;;  %v1525_v51 = vpop.f32.mrb[87].mxu1  ;;  %v687_v52 = vmax.f32 %v609_v47, 0.0  ;;  %v2113_v47 = vld [vmem:[%s2311_s6] ss:$0 sm:$0xff] }
 0x21e   :  { %v688_v53 = vmax.f32 %v612_v50, 0.0 }
 0x220   :  { %v713_v54 = vpack.c.bf16 %v688_v53, %v687_v52 }
 0x221   :  { %v616_v55 = vpop.f32.mrb[88].mxu1 }
 0x222   :  { %v617_v56 = vadd.f32 %v2015_v5, %v616_v55  ;;  %v1528_v57 = vpop.f32.mrb[89].mxu1  ;;  %1603 = vmatmul.mubr.msk.bf16.gmra.mrb[88].mxu0 %vm107_vm1, %v713_v54 }
 0x223   :  { %v619_v58 = vpop.f32.mrb[90].mxu1  ;;  %1606 = vmatprep.mubr.msk.bf16.mxu0 %vm1649_vm0, %v1648_v0 }
 0x224   :  { %v620_v60 = vadd.f32 %v2015_v5, %v619_v58  ;;  %v1529_v61 = vpop.f32.mrb[91].mxu1  ;;  %v689_v62 = vmax.f32 %v617_v56, 0.0 }
 0x226   :  { %v690_v27 = vmax.f32 %v620_v60, 0.0 }
 0x228   :  { %v714_v45 = vpack.c.bf16 %v690_v27, %v689_v62 }
 0x229   :  { %v624_v2 = vpop.f32.mrb[92].mxu1 }
 0x22a   :  { %v625_v21 = vadd.f32 %v2015_v5, %v624_v2  ;;  %v1532_v40 = vpop.f32.mrb[93].mxu1  ;;  %1607 = vmatmul.mubr.msk.bf16.gmra.mrb[92].mxu0 %vm107_vm1, %v714_v45 }
 0x22b   :  { %v627_v59 = vpop.f32.mrb[94].mxu1  ;;  %1610 = vmatprep.mubr.msk.bf16.mxu0 %vm1649_vm0, %v1648_v0 }
 0x22c   :  { %v628_v63 = vadd.f32 %v2015_v5, %v627_v59  ;;  %v1533_v1 = vpop.f32.mrb[95].mxu1  ;;  %v691_v3 = vmax.f32 %v625_v21, 0.0 }
 0x22e   :  { %v692_v4 = vmax.f32 %v628_v63, 0.0 }
 0x230   :  { %v715_v6 = vpack.c.bf16 %v692_v4, %v691_v3 }
 0x231   :  { %v632_v7 = vpop.f32.mrb[96].mxu1 }
 0x232   :  { %v633_v8 = vadd.f32 %v2015_v5, %v632_v7  ;;  %v1536_v9 = vpop.f32.mrb[97].mxu1  ;;  %1611 = vmatmul.mubr.msk.bf16.gmra.mrb[96].mxu0 %vm107_vm1, %v715_v6 }
 0x233   :  { %v635_v10 = vpop.f32.mrb[98].mxu1  ;;  %1614 = vmatprep.mubr.msk.bf16.mxu0 %vm1649_vm0, %v1648_v0 }
 0x234   :  { %v636_v11 = vadd.f32 %v2015_v5, %v635_v10  ;;  %v1537_v12 = vpop.f32.mrb[99].mxu1  ;;  %v693_v13 = vmax.f32 %v633_v8, 0.0 }
 0x236   :  { %v694_v14 = vmax.f32 %v636_v11, 0.0 }
 0x238   :  { %v716_v15 = vpack.c.bf16 %v694_v14, %v693_v13 }
 0x239   :  { %v640_v16 = vpop.f32.mrb[100].mxu1 }
 0x23a   :  { %v641_v17 = vadd.f32 %v2015_v5, %v640_v16  ;;  %v1540_v18 = vpop.f32.mrb[101].mxu1  ;;  %1615 = vmatmul.mubr.msk.bf16.gmra.mrb[100].mxu0 %vm107_vm1, %v716_v15 }
 0x23b   :  { %v643_v19 = vpop.f32.mrb[102].mxu1  ;;  %1618 = vmatprep.mubr.msk.bf16.mxu0 %vm1649_vm0, %v1648_v0 }
 0x23c   :  { %v644_v20 = vadd.f32 %v2015_v5, %v643_v19  ;;  %v1541_v22 = vpop.f32.mrb[103].mxu1  ;;  %v695_v23 = vmax.f32 %v641_v17, 0.0 }
 0x23e   :  { %v696_v24 = vmax.f32 %v644_v20, 0.0 }
 0x240   :  { %v717_v25 = vpack.c.bf16 %v696_v24, %v695_v23 }
 0x241   :  { %v648_v26 = vpop.f32.mrb[104].mxu1 }
 0x242   :  { %v649_v28 = vadd.f32 %v2015_v5, %v648_v26  ;;  %v1544_v29 = vpop.f32.mrb[105].mxu1  ;;  %1619 = vmatmul.mubr.msk.bf16.gmra.mrb[104].mxu0 %vm107_vm1, %v717_v25 }
 0x243   :  { %v651_v30 = vpop.f32.mrb[106].mxu1  ;;  %1622 = vmatprep.mubr.msk.bf16.mxu0 %vm1649_vm0, %v1648_v0 }
 0x244   :  { %v652_v31 = vadd.f32 %v2015_v5, %v651_v30  ;;  %v1545_v32 = vpop.f32.mrb[107].mxu1  ;;  %v697_v33 = vmax.f32 %v649_v28, 0.0 }
 0x246   :  { %v698_v34 = vmax.f32 %v652_v31, 0.0 }
 0x248   :  { %v718_v35 = vpack.c.bf16 %v698_v34, %v697_v33 }
 0x249   :  { %v656_v36 = vpop.f32.mrb[108].mxu1 }
 0x24a   :  { %v657_v37 = vadd.f32 %v2015_v5, %v656_v36  ;;  %v1548_v38 = vpop.f32.mrb[109].mxu1  ;;  %1623 = vmatmul.mubr.msk.bf16.gmra.mrb[108].mxu0 %vm107_vm1, %v718_v35 }
 0x24b   :  { %v659_v39 = vpop.f32.mrb[110].mxu1  ;;  %1626 = vmatprep.mubr.msk.bf16.mxu0 %vm1649_vm0, %v1648_v0 }
 0x24c   :  { %v660_v41 = vadd.f32 %v2015_v5, %v659_v39  ;;  %v1549_v42 = vpop.f32.mrb[111].mxu1  ;;  %v699_v43 = vmax.f32 %v657_v37, 0.0 }
 0x24e   :  { %v700_v44 = vmax.f32 %v660_v41, 0.0 }
 0x250   :  { %v719_v46 = vpack.c.bf16 %v700_v44, %v699_v43 }
 0x252   :  { %1627 = vmatmul.mubr.msk.bf16.gmra.mrb[112].mxu0 %vm107_vm1, %v719_v46 }
 0x295   :  { %v834_v48 = vpop.f32.mrb[40].mxu0 }
 0x296   :  { %v835_v49 = vadd.f32 %v2113_v47, %v834_v48  ;;  %v1556_v50 = vpop.f32.mrb[41].mxu0 }
 0x297   :  { %v837_v51 = vpop.f32.mrb[42].mxu0 }
 0x298   :  { %v1271_v0 = vpack.c.bf16 %v835_v49, %v835_v49  ;;  %v838_v5 = vadd.f32 %v2113_v47, %v837_v51  ;;  %v1557_v52 = vpop.f32.mrb[43].mxu0 }
 0x29a   :  { %1138 = vst.msk [vmem:[%s2312_s7] sm:$0xf] %vm1137_vm2, %v1271_v0  ;;  %v1272_v53 = vpack.c.bf16 %v838_v5, %v838_v5 }
 0x29c   :  { %1139 = vst.msk [vmem:[%s2312_s7 + $0x4] sm:$0xf] %vm1137_vm2, %v1272_v53 }
 0x29d   :  { %v842_v54 = vpop.f32.mrb[44].mxu0 }
 0x29e   :  { %v843_v55 = vadd.f32 %v2113_v47, %v842_v54  ;;  %v1560_v56 = vpop.f32.mrb[45].mxu0 }
 0x29f   :  { %v845_v57 = vpop.f32.mrb[46].mxu0 }
 0x2a0   :  { %v1273_v58 = vpack.c.bf16 %v843_v55, %v843_v55  ;;  %v846_v60 = vadd.f32 %v2113_v47, %v845_v57  ;;  %v1561_v61 = vpop.f32.mrb[47].mxu0 }
 0x2a2   :  { %1140 = vst.msk [vmem:[%s2312_s7 + $0x8] sm:$0xf] %vm1137_vm2, %v1273_v58  ;;  %v1274_v62 = vpack.c.bf16 %v846_v60, %v846_v60 }
 0x2a4   :  { %1141 = vst.msk [vmem:[%s2312_s7 + $0xc] sm:$0xf] %vm1137_vm2, %v1274_v62 }
 0x2a5   :  { %v850_v27 = vpop.f32.mrb[48].mxu0 }
 0x2a6   :  { %v851_v45 = vadd.f32 %v2113_v47, %v850_v27  ;;  %v1564_v2 = vpop.f32.mrb[49].mxu0 }
 0x2a7   :  { %v853_v21 = vpop.f32.mrb[50].mxu0 }
 0x2a8   :  { %v1275_v40 = vpack.c.bf16 %v851_v45, %v851_v45  ;;  %v854_v59 = vadd.f32 %v2113_v47, %v853_v21  ;;  %v1565_v63 = vpop.f32.mrb[51].mxu0 }
 0x2aa   :  { %1142 = vst.msk [vmem:[%s2312_s7 + $0x10] sm:$0xf] %vm1137_vm2, %v1275_v40  ;;  %v1276_v1 = vpack.c.bf16 %v854_v59, %v854_v59 }
 0x2ac   :  { %1143 = vst.msk [vmem:[%s2312_s7 + $0x14] sm:$0xf] %vm1137_vm2, %v1276_v1 }
 0x2ad   :  { %v858_v3 = vpop.f32.mrb[52].mxu0 }
 0x2ae   :  { %v859_v4 = vadd.f32 %v2113_v47, %v858_v3  ;;  %v1568_v6 = vpop.f32.mrb[53].mxu0 }
 0x2af   :  { %v861_v7 = vpop.f32.mrb[54].mxu0 }
 0x2b0   :  { %v1277_v8 = vpack.c.bf16 %v859_v4, %v859_v4  ;;  %v862_v9 = vadd.f32 %v2113_v47, %v861_v7  ;;  %v1569_v10 = vpop.f32.mrb[55].mxu0 }
 0x2b2   :  { %1144 = vst.msk [vmem:[%s2312_s7 + $0x18] sm:$0xf] %vm1137_vm2, %v1277_v8  ;;  %v1278_v11 = vpack.c.bf16 %v862_v9, %v862_v9 }
 0x2b4   :  { %1145 = vst.msk [vmem:[%s2312_s7 + $0x1c] sm:$0xf] %vm1137_vm2, %v1278_v11 }
 0x2b5   :  { %v866_v12 = vpop.f32.mrb[56].mxu0 }
 0x2b6   :  { %v867_v13 = vadd.f32 %v2113_v47, %v866_v12  ;;  %v1572_v14 = vpop.f32.mrb[57].mxu0 }
 0x2b7   :  { %v869_v15 = vpop.f32.mrb[58].mxu0 }
 0x2b8   :  { %v1279_v16 = vpack.c.bf16 %v867_v13, %v867_v13  ;;  %v870_v17 = vadd.f32 %v2113_v47, %v869_v15  ;;  %v1573_v18 = vpop.f32.mrb[59].mxu0 }
 0x2ba   :  { %1146 = vst.msk [vmem:[%s2312_s7 + $0x20] sm:$0xf] %vm1137_vm2, %v1279_v16  ;;  %v1280_v19 = vpack.c.bf16 %v870_v17, %v870_v17 }
 0x2bc   :  { %1147 = vst.msk [vmem:[%s2312_s7 + $0x24] sm:$0xf] %vm1137_vm2, %v1280_v19 }
 0x2bd   :  { %v874_v20 = vpop.f32.mrb[60].mxu0 }
 0x2be   :  { %v875_v22 = vadd.f32 %v2113_v47, %v874_v20  ;;  %v1576_v23 = vpop.f32.mrb[61].mxu0 }
 0x2bf   :  { %v877_v24 = vpop.f32.mrb[62].mxu0 }
 0x2c0   :  { %v1281_v25 = vpack.c.bf16 %v875_v22, %v875_v22  ;;  %v878_v26 = vadd.f32 %v2113_v47, %v877_v24  ;;  %v1577_v28 = vpop.f32.mrb[63].mxu0 }
 0x2c2   :  { %1148 = vst.msk [vmem:[%s2312_s7 + $0x28] sm:$0xf] %vm1137_vm2, %v1281_v25  ;;  %v1282_v29 = vpack.c.bf16 %v878_v26, %v878_v26 }
 0x2c4   :  { %1149 = vst.msk [vmem:[%s2312_s7 + $0x2c] sm:$0xf] %vm1137_vm2, %v1282_v29 }
 0x2c5   :  { %v882_v30 = vpop.f32.mrb[64].mxu0 }
 0x2c6   :  { %v883_v31 = vadd.f32 %v2113_v47, %v882_v30  ;;  %v1580_v32 = vpop.f32.mrb[65].mxu0 }
 0x2c7   :  { %v885_v33 = vpop.f32.mrb[66].mxu0 }
 0x2c8   :  { %v1283_v34 = vpack.c.bf16 %v883_v31, %v883_v31  ;;  %v886_v35 = vadd.f32 %v2113_v47, %v885_v33  ;;  %v1581_v36 = vpop.f32.mrb[67].mxu0 }
 0x2ca   :  { %1150 = vst.msk [vmem:[%s2312_s7 + $0x30] sm:$0xf] %vm1137_vm2, %v1283_v34  ;;  %v1284_v37 = vpack.c.bf16 %v886_v35, %v886_v35 }
 0x2cc   :  { %1151 = vst.msk [vmem:[%s2312_s7 + $0x34] sm:$0xf] %vm1137_vm2, %v1284_v37 }
 0x2cd   :  { %v890_v38 = vpop.f32.mrb[68].mxu0 }
 0x2ce   :  { %v891_v39 = vadd.f32 %v2113_v47, %v890_v38  ;;  %v1584_v41 = vpop.f32.mrb[69].mxu0 }
 0x2cf   :  { %v893_v42 = vpop.f32.mrb[70].mxu0 }
 0x2d0   :  { %v1285_v43 = vpack.c.bf16 %v891_v39, %v891_v39  ;;  %v894_v44 = vadd.f32 %v2113_v47, %v893_v42  ;;  %v1585_v46 = vpop.f32.mrb[71].mxu0 }
 0x2d2   :  { %1152 = vst.msk [vmem:[%s2312_s7 + $0x38] sm:$0xf] %vm1137_vm2, %v1285_v43  ;;  %v1286_v48 = vpack.c.bf16 %v894_v44, %v894_v44 }
 0x2d4   :  { %1153 = vst.msk [vmem:[%s2312_s7 + $0x3c] sm:$0xf] %vm1137_vm2, %v1286_v48 }
 0x2d5   :  { %v898_v49 = vpop.f32.mrb[72].mxu0 }
 0x2d6   :  { %v899_v50 = vadd.f32 %v2113_v47, %v898_v49  ;;  %v1588_v51 = vpop.f32.mrb[73].mxu0 }
 0x2d7   :  { %v901_v0 = vpop.f32.mrb[74].mxu0 }
 0x2d8   :  { %v1287_v5 = vpack.c.bf16 %v899_v50, %v899_v50  ;;  %v902_v52 = vadd.f32 %v2113_v47, %v901_v0  ;;  %v1589_v53 = vpop.f32.mrb[75].mxu0 }
 0x2da   :  { %1154 = vst.msk [vmem:[%s2312_s7 + $0x40] sm:$0xf] %vm1137_vm2, %v1287_v5  ;;  %v1288_v54 = vpack.c.bf16 %v902_v52, %v902_v52 }
 0x2dc   :  { %1155 = vst.msk [vmem:[%s2312_s7 + $0x44] sm:$0xf] %vm1137_vm2, %v1288_v54 }
 0x2dd   :  { %v906_v55 = vpop.f32.mrb[76].mxu0 }
 0x2de   :  { %v907_v56 = vadd.f32 %v2113_v47, %v906_v55  ;;  %v1592_v57 = vpop.f32.mrb[77].mxu0 }
 0x2df   :  { %v909_v58 = vpop.f32.mrb[78].mxu0 }
 0x2e0   :  { %v1289_v60 = vpack.c.bf16 %v907_v56, %v907_v56  ;;  %v910_v61 = vadd.f32 %v2113_v47, %v909_v58  ;;  %v1593_v62 = vpop.f32.mrb[79].mxu0 }
 0x2e2   :  { %1156 = vst.msk [vmem:[%s2312_s7 + $0x48] sm:$0xf] %vm1137_vm2, %v1289_v60  ;;  %v1290_v27 = vpack.c.bf16 %v910_v61, %v910_v61 }
 0x2e4   :  { %1157 = vst.msk [vmem:[%s2312_s7 + $0x4c] sm:$0xf] %vm1137_vm2, %v1290_v27 }
 0x2e5   :  { %v914_v45 = vpop.f32.mrb[80].mxu0 }
 0x2e6   :  { %v915_v2 = vadd.f32 %v2113_v47, %v914_v45  ;;  %v1596_v21 = vpop.f32.mrb[81].mxu0 }
 0x2e7   :  { %v917_v40 = vpop.f32.mrb[82].mxu0 }
 0x2e8   :  { %v1291_v59 = vpack.c.bf16 %v915_v2, %v915_v2  ;;  %v918_v63 = vadd.f32 %v2113_v47, %v917_v40  ;;  %v1597_v1 = vpop.f32.mrb[83].mxu0 }
 0x2ea   :  { %1158 = vst.msk [vmem:[%s2312_s7 + $0x50] sm:$0xf] %vm1137_vm2, %v1291_v59  ;;  %v1292_v3 = vpack.c.bf16 %v918_v63, %v918_v63 }
 0x2ec   :  { %1159 = vst.msk [vmem:[%s2312_s7 + $0x54] sm:$0xf] %vm1137_vm2, %v1292_v3 }
 0x2ed   :  { %v922_v4 = vpop.f32.mrb[84].mxu0 }
 0x2ee   :  { %v923_v6 = vadd.f32 %v2113_v47, %v922_v4  ;;  %v1600_v7 = vpop.f32.mrb[85].mxu0 }
 0x2ef   :  { %v925_v8 = vpop.f32.mrb[86].mxu0 }
 0x2f0   :  { %v1293_v9 = vpack.c.bf16 %v923_v6, %v923_v6  ;;  %v926_v10 = vadd.f32 %v2113_v47, %v925_v8  ;;  %v1601_v11 = vpop.f32.mrb[87].mxu0 }
 0x2f2   :  { %1160 = vst.msk [vmem:[%s2312_s7 + $0x58] sm:$0xf] %vm1137_vm2, %v1293_v9  ;;  %v1294_v12 = vpack.c.bf16 %v926_v10, %v926_v10 }
 0x2f4   :  { %1161 = vst.msk [vmem:[%s2312_s7 + $0x5c] sm:$0xf] %vm1137_vm2, %v1294_v12 }
 0x2f5   :  { %v930_v13 = vpop.f32.mrb[88].mxu0 }
 0x2f6   :  { %v931_v14 = vadd.f32 %v2113_v47, %v930_v13  ;;  %v1604_v15 = vpop.f32.mrb[89].mxu0 }
 0x2f7   :  { %v933_v16 = vpop.f32.mrb[90].mxu0 }
 0x2f8   :  { %v1295_v17 = vpack.c.bf16 %v931_v14, %v931_v14  ;;  %v934_v18 = vadd.f32 %v2113_v47, %v933_v16  ;;  %v1605_v19 = vpop.f32.mrb[91].mxu0 }
 0x2fa   :  { %1162 = vst.msk [vmem:[%s2312_s7 + $0x60] sm:$0xf] %vm1137_vm2, %v1295_v17  ;;  %v1296_v20 = vpack.c.bf16 %v934_v18, %v934_v18 }
 0x2fc   :  { %1163 = vst.msk [vmem:[%s2312_s7 + $0x64] sm:$0xf] %vm1137_vm2, %v1296_v20 }
 0x2fd   :  { %v938_v22 = vpop.f32.mrb[92].mxu0 }
 0x2fe   :  { %v939_v23 = vadd.f32 %v2113_v47, %v938_v22  ;;  %v1608_v24 = vpop.f32.mrb[93].mxu0 }
 0x2ff   :  { %v941_v25 = vpop.f32.mrb[94].mxu0 }
 0x300   :  { %v1297_v26 = vpack.c.bf16 %v939_v23, %v939_v23  ;;  %v942_v28 = vadd.f32 %v2113_v47, %v941_v25  ;;  %v1609_v29 = vpop.f32.mrb[95].mxu0 }
 0x302   :  { %1164 = vst.msk [vmem:[%s2312_s7 + $0x68] sm:$0xf] %vm1137_vm2, %v1297_v26  ;;  %v1298_v30 = vpack.c.bf16 %v942_v28, %v942_v28 }
 0x304   :  { %1165 = vst.msk [vmem:[%s2312_s7 + $0x6c] sm:$0xf] %vm1137_vm2, %v1298_v30 }
 0x305   :  { %v946_v31 = vpop.f32.mrb[96].mxu0 }
 0x306   :  { %v947_v32 = vadd.f32 %v2113_v47, %v946_v31  ;;  %v1612_v33 = vpop.f32.mrb[97].mxu0 }
 0x307   :  { %v949_v34 = vpop.f32.mrb[98].mxu0 }
 0x308   :  { %v1299_v35 = vpack.c.bf16 %v947_v32, %v947_v32  ;;  %v950_v36 = vadd.f32 %v2113_v47, %v949_v34  ;;  %v1613_v37 = vpop.f32.mrb[99].mxu0 }
 0x30a   :  { %1166 = vst.msk [vmem:[%s2312_s7 + $0x70] sm:$0xf] %vm1137_vm2, %v1299_v35  ;;  %v1300_v38 = vpack.c.bf16 %v950_v36, %v950_v36 }
 0x30c   :  { %1167 = vst.msk [vmem:[%s2312_s7 + $0x74] sm:$0xf] %vm1137_vm2, %v1300_v38 }
 0x30d   :  { %v954_v39 = vpop.f32.mrb[100].mxu0 }
 0x30e   :  { %v955_v41 = vadd.f32 %v2113_v47, %v954_v39  ;;  %v1616_v42 = vpop.f32.mrb[101].mxu0 }
 0x30f   :  { %v957_v43 = vpop.f32.mrb[102].mxu0 }
 0x310   :  { %v1301_v44 = vpack.c.bf16 %v955_v41, %v955_v41  ;;  %v958_v46 = vadd.f32 %v2113_v47, %v957_v43  ;;  %v1617_v48 = vpop.f32.mrb[103].mxu0 }
 0x312   :  { %1168 = vst.msk [vmem:[%s2312_s7 + $0x78] sm:$0xf] %vm1137_vm2, %v1301_v44  ;;  %v1302_v49 = vpack.c.bf16 %v958_v46, %v958_v46 }
 0x314   :  { %1169 = vst.msk [vmem:[%s2312_s7 + $0x7c] sm:$0xf] %vm1137_vm2, %v1302_v49 }
 0x315   :  { %v962_v50 = vpop.f32.mrb[104].mxu0 }
 0x316   :  { %v963_v51 = vadd.f32 %v2113_v47, %v962_v50  ;;  %v1620_v0 = vpop.f32.mrb[105].mxu0 }
 0x317   :  { %v965_v5 = vpop.f32.mrb[106].mxu0 }
 0x318   :  { %v1303_v52 = vpack.c.bf16 %v963_v51, %v963_v51  ;;  %v966_v53 = vadd.f32 %v2113_v47, %v965_v5  ;;  %v1621_v54 = vpop.f32.mrb[107].mxu0 }
 0x31a   :  { %1170 = vst.msk [vmem:[%s2312_s7 + $0x80] sm:$0xf] %vm1137_vm2, %v1303_v52  ;;  %v1304_v55 = vpack.c.bf16 %v966_v53, %v966_v53 }
 0x31c   :  { %1171 = vst.msk [vmem:[%s2312_s7 + $0x84] sm:$0xf] %vm1137_vm2, %v1304_v55 }
 0x31d   :  { %v970_v56 = vpop.f32.mrb[108].mxu0 }
 0x31e   :  { %v971_v57 = vadd.f32 %v2113_v47, %v970_v56  ;;  %v1624_v58 = vpop.f32.mrb[109].mxu0 }
 0x31f   :  { %v973_v60 = vpop.f32.mrb[110].mxu0 }
 0x320   :  { %v1305_v61 = vpack.c.bf16 %v971_v57, %v971_v57  ;;  %v974_v62 = vadd.f32 %v2113_v47, %v973_v60  ;;  %v1625_v27 = vpop.f32.mrb[111].mxu0 }
 0x322   :  { %1172 = vst.msk [vmem:[%s2312_s7 + $0x88] sm:$0xf] %vm1137_vm2, %v1305_v61  ;;  %v1306_v45 = vpack.c.bf16 %v974_v62, %v974_v62 }
 0x324   :  { %1173 = vst.msk [vmem:[%s2312_s7 + $0x8c] sm:$0xf] %vm1137_vm2, %v1306_v45 }
 0x325   :  { %v978_v2 = vpop.f32.mrb[112].mxu0 }
 0x326   :  { %v979_v21 = vadd.f32 %v2113_v47, %v978_v2  ;;  %v1628_v40 = vpop.f32.mrb[113].mxu0 }
 0x327   :  { %v981_v59 = vpop.f32.mrb[114].mxu0 }
 0x328   :  { %v1307_v63 = vpack.c.bf16 %v979_v21, %v979_v21  ;;  %v982_v1 = vadd.f32 %v2113_v47, %v981_v59  ;;  %v1629_v3 = vpop.f32.mrb[115].mxu0 }
 0x32a   :  { %1174 = vst.msk [vmem:[%s2312_s7 + $0x90] sm:$0xf] %vm1137_vm2, %v1307_v63  ;;  %v1308_v4 = vpack.c.bf16 %v982_v1, %v982_v1 }
 0x32c   :  { %1175 = vst.msk [vmem:[%s2312_s7 + $0x94] sm:$0xf] %vm1137_vm2, %v1308_v4 }

// kernel: tpu_custom_call.1
= control target key start
LH: loop header
LB: loop body
LE: loop exit
PB: predicated region body
PF: predicated region fallthrough
CT: control target
= control target key end

     0   :  { %v1648_v0 = vmov 0.0   ;;  %vm1649_vm0 = vmmov 0   ;;  %vm107_vm1 = vcmask 261120   ;;  %vm1137_vm2 = vcmask 60416   ;;  %s2305_s1 = inlined_call_operand.vmem [shape: bf16[32,128], index: 1, kind: input, shape index: {}]   ;;  %s2306_s0 = inlined_call_operand.vmem [shape: f32[300,32], index: 0, kind: input, shape index: {}]   ;;  %s2307_s3 = inlined_call_operand.vmem [shape: bf16[128,32], index: 3, kind: input, shape index: {}]   ;;  %s2308_s2 = inlined_call_operand.vmem [shape: f32[1,128], index: 2, kind: input, shape index: {}]   ;;  %s2309_s5 = inlined_call_operand.vmem [shape: bf16[32,8], index: 5, kind: input, shape index: {}]   ;;  %s2310_s4 = inlined_call_operand.vmem [shape: f32[1,32], index: 4, kind: input, shape index: {}]   ;;  %s2311_s6 = inlined_call_operand.vmem [shape: f32[1,8], index: 6, kind: input, shape index: {}]   ;;  %s2312_s7 = inlined_call_operand.vmem [shape: bf16[300,8], index: 7, kind: output, shape index: {}]  }
   0x1   :  { %1378 = vmatprep.subr.bf16.mxu0 %v1648_v0  ;;  %v1636_v1 = vld [vmem:[%s2305_s1] sm:$0xff]   ;;  %1382 = vmatprep.mubr.msk.bf16.mxu0 %vm1649_vm0, %v1648_v0  ;;  %v1637_v2 = vld [vmem:[%s2305_s1 + $0x8] sm:$0xff]   ;;  %v29_v8 = vld [vmem:[%s2306_s0 + $0x10] sm:$0xff] }
   0x2   :  { %1630 = vmatprep.subr.bf16.mxu1 %v1648_v0  ;;  %1422 = vmatprep.mubr.msk.bf16.mxu1 %vm1649_vm0, %v1648_v0  ;;  %v27_v3 = vld [vmem:[%s2306_s0] sm:$0xff]  ;;  %v28_v4 = vld [vmem:[%s2306_s0 + $0x8] sm:$0xff]  ;;  %v30_v9 = vld [vmem:[%s2306_s0 + $0x18] sm:$0xff] }
   0x3   :  { %1379 = vmatpush3.bf16.msra.mxu0 %v1636_v1  ;;  %1632 = vmatpush3.bf16.msra.mxu1 %v1636_v1  ;;  %v65_v5 = vpack.c.bf16 %v28_v4, %v27_v3  ;;  %v47_v6 = vld [vmem:[%s2306_s0 + $0xa0] sm:$0xff]  ;;  %v48_v7 = vld [vmem:[%s2306_s0 + $0xa8] sm:$0xff]  ;;  %v66_v11 = vpack.c.bf16 %v30_v9, %v29_v8  ;;  %v49_v12 = vld [vmem:[%s2306_s0 + $0xb0] sm:$0xff] }
   0x4   :  { %1380 = vmatprep.subr.bf16.mxu0 %v1648_v0  ;;  %1631 = vmatprep.subr.bf16.mxu1 %v1648_v0  ;;  %v75_v10 = vpack.c.bf16 %v48_v7, %v47_v6  ;;  %v50_v13 = vld [vmem:[%s2306_s0 + $0xb8] sm:$0xff]  ;;  %v1638_v14 = vld [vmem:[%s2307_s3] sm:$0xff]   ;;  %v1639_v17 = vld [vmem:[%s2307_s3 + $0x8] sm:$0xff]  }
   0x5   :  { %v31_v15 = vld [vmem:[%s2306_s0 + $0x20] sm:$0xff]  ;;  %v76_v16 = vpack.c.bf16 %v50_v13, %v49_v12  ;;  %v32_v18 = vld [vmem:[%s2306_s0 + $0x28] sm:$0xff]  ;;  %v1640_v22 = vld [vmem:[%s2307_s3 + $0x10] sm:$0xff]  }
   0x6   :  { %v51_v19 = vld [vmem:[%s2306_s0 + $0xc0] sm:$0xff]  ;;  %v67_v20 = vpack.c.bf16 %v32_v18, %v31_v15  ;;  %v52_v21 = vld [vmem:[%s2306_s0 + $0xc8] sm:$0xff]  ;;  %v1641_v24 = vld [vmem:[%s2307_s3 + $0x18] sm:$0xff]  }
   0x7   :  { %1381 = vmatpush3.bf16.msra.mxu0 %v1637_v2  ;;  %1633 = vmatpush3.bf16.msra.mxu1 %v1637_v2  ;;  %v77_v23 = vpack.c.bf16 %v52_v21, %v51_v19  ;;  %v33_v25 = vld [vmem:[%s2306_s0 + $0x30] sm:$0xff]  ;;  %v34_v26 = vld [vmem:[%s2306_s0 + $0x38] sm:$0xff]  ;;  %v1642_v30 = vld [vmem:[%s2307_s3 + $0x20] sm:$0xff]  }
   0x8   :  { %1458 = vmatprep.subr.bf16.mxu1 %v1648_v0  ;;  %1550 = vmatprep.subr.bf16.mxu0 %v1648_v0  ;;  %v68_v27 = vpack.c.bf16 %v34_v26, %v33_v25  ;;  %v53_v28 = vld [vmem:[%s2306_s0 + $0xd0] sm:$0xff]  ;;  %v54_v29 = vld [vmem:[%s2306_s0 + $0xd8] sm:$0xff]  ;;  %v1643_v32 = vld [vmem:[%s2307_s3 + $0x28] sm:$0xff]  }
   0x9   :  { %v78_v31 = vpack.c.bf16 %v54_v29, %v53_v28  ;;  %v35_v33 = vld [vmem:[%s2306_s0 + $0x40] sm:$0xff]  ;;  %v36_v34 = vld [vmem:[%s2306_s0 + $0x48] sm:$0xff]  ;;  %v1644_v38 = vld [vmem:[%s2307_s3 + $0x30] sm:$0xff]  }
   0xa   :  { %1383 = vmatmul.mubr.msk.bf16.vlgmr.msra.gmra.mrb[0].mxu0 %vm107_vm1, %v65_v5  ;;  %1423 = vmatmul.mubr.msk.bf16.vlgmr.msra.gmra.mrb[0].mxu1 %vm107_vm1, %v75_v10  ;;  %v69_v35 = vpack.c.bf16 %v36_v34, %v35_v33  ;;  %v55_v36 = vld [vmem:[%s2306_s0 + $0xe0] sm:$0xff]  ;;  %v56_v37 = vld [vmem:[%s2306_s0 + $0xe8] sm:$0xff]  ;;  %v37_v40 = vld [vmem:[%s2306_s0 + $0x50] sm:$0xff] }
   0xb   :  { %1386 = vmatprep.mubr.msk.bf16.mxu0 %vm1649_vm0, %v1648_v0  ;;  %1426 = vmatprep.mubr.msk.bf16.mxu1 %vm1649_vm0, %v1648_v0  ;;  %v79_v39 = vpack.c.bf16 %v56_v37, %v55_v36  ;;  %v38_v41 = vld [vmem:[%s2306_s0 + $0x58] sm:$0xff]  ;;  %v57_v43 = vld [vmem:[%s2306_s0 + $0xf0] sm:$0xff]  ;;  %v39_v46 = vld [vmem:[%s2306_s0 + $0x60] sm:$0xff] }
   0xc   :  { %1459 = vmatpush3.bf16.msra.mxu1 %v1638_v14  ;;  %v70_v42 = vpack.c.bf16 %v38_v41, %v37_v40  ;;  %v58_v44 = vld [vmem:[%s2306_s0 + $0xf8] sm:$0xff]  ;;  %v40_v47 = vld [vmem:[%s2306_s0 + $0x68] sm:$0xff]  ;;  %v59_v49 = vld [vmem:[%s2306_s0 + $0x100] sm:$0xff] }
   0xd   :  { %1460 = vmatprep.subr.bf16.mxu1 %v1648_v0  ;;  %v80_v45 = vpack.c.bf16 %v58_v44, %v57_v43  ;;  %v71_v48 = vpack.c.bf16 %v40_v47, %v39_v46  ;;  %v60_v50 = vld [vmem:[%s2306_s0 + $0x108] sm:$0xff]  ;;  %v41_v52 = vld [vmem:[%s2306_s0 + $0x70] sm:$0xff]  ;;  %v42_v53 = vld [vmem:[%s2306_s0 + $0x78] sm:$0xff] }
   0xe   :  { %v81_v51 = vpack.c.bf16 %v60_v50, %v59_v49  ;;  %v72_v54 = vpack.c.bf16 %v42_v53, %v41_v52  ;;  %v61_v55 = vld [vmem:[%s2306_s0 + $0x110] sm:$0xff]  ;;  %v62_v56 = vld [vmem:[%s2306_s0 + $0x118] sm:$0xff]  ;;  %v43_v58 = vld [vmem:[%s2306_s0 + $0x80] sm:$0xff] }
   0xf   :  { %v82_v57 = vpack.c.bf16 %v62_v56, %v61_v55  ;;  %v44_v59 = vld [vmem:[%s2306_s0 + $0x88] sm:$0xff]  ;;  %v63_v61 = vld [vmem:[%s2306_s0 + $0x120] sm:$0xff]  ;;  %v45_v1 = vld [vmem:[%s2306_s0 + $0x90] sm:$0xff] }
  0x10   :  { %1461 = vmatpush3.bf16.msra.mxu1 %v1639_v17  ;;  %v73_v60 = vpack.c.bf16 %v44_v59, %v43_v58  ;;  %v64_v62 = vld [vmem:[%s2306_s0 + $0x128] sm:$0xff]  ;;  %v46_v2 = vld [vmem:[%s2306_s0 + $0x98] sm:$0xff]  ;;  %v1911_v5 = vld [vmem:[%s2308_s2] ss:$0 sm:$0xff] }
  0x11   :  { %1462 = vmatprep.subr.bf16.mxu1 %v1648_v0  ;;  %v83_v63 = vpack.c.bf16 %v64_v62, %v63_v61  ;;  %v74_v3 = vpack.c.bf16 %v46_v2, %v45_v1  ;;  %v1645_v4 = vld [vmem:[%s2307_s3 + $0x38] sm:$0xff]   ;;  %v1646_v46 = vld [vmem:[%s2309_s5] sm:$0xff]  }
  0x12   :  { %1387 = vmatmul.mubr.msk.bf16.gmra.mrb[4].mxu0 %vm107_vm1, %v66_v11  ;;  %1427 = vmatmul.mubr.msk.bf16.gmra.mrb[4].mxu1 %vm107_vm1, %v76_v16 }
  0x13   :  { %1390 = vmatprep.mubr.msk.bf16.mxu0 %vm1649_vm0, %v1648_v0  ;;  %1430 = vmatprep.mubr.msk.bf16.mxu1 %vm1649_vm0, %v1648_v0 }
  0x14   :  { %1463 = vmatpush3.bf16.msra.mxu1 %v1640_v22  ;;  %1551 = vmatpush3.bf16.msra.mxu0 %v1646_v46 }
  0x15   :  { %1464 = vmatprep.subr.bf16.mxu1 %v1648_v0  ;;  %1552 = vmatprep.subr.bf16.mxu0 %v1648_v0 }
  0x18   :  { %1465 = vmatpush3.bf16.msra.mxu1 %v1641_v24 }
  0x19   :  { %1466 = vmatprep.subr.bf16.mxu1 %v1648_v0 }
  0x1a   :  { %1391 = vmatmul.mubr.msk.bf16.gmra.mrb[8].mxu0 %vm107_vm1, %v67_v20  ;;  %1431 = vmatmul.mubr.msk.bf16.gmra.mrb[8].mxu1 %vm107_vm1, %v77_v23 }
  0x1b   :  { %1394 = vmatprep.mubr.msk.bf16.mxu0 %vm1649_vm0, %v1648_v0  ;;  %1434 = vmatprep.mubr.msk.bf16.mxu1 %vm1649_vm0, %v1648_v0 }
  0x1c   :  { %1467 = vmatpush3.bf16.msra.mxu1 %v1642_v30 }
  0x1d   :  { %1468 = vmatprep.subr.bf16.mxu1 %v1648_v0 }
  0x20   :  { %1469 = vmatpush3.bf16.msra.mxu1 %v1643_v32 }
  0x21   :  { %1470 = vmatprep.subr.bf16.mxu1 %v1648_v0 }
  0x22   :  { %1395 = vmatmul.mubr.msk.bf16.gmra.mrb[12].mxu0 %vm107_vm1, %v68_v27  ;;  %1435 = vmatmul.mubr.msk.bf16.gmra.mrb[12].mxu1 %vm107_vm1, %v78_v31 }
  0x23   :  { %1398 = vmatprep.mubr.msk.bf16.mxu0 %vm1649_vm0, %v1648_v0  ;;  %1438 = vmatprep.mubr.msk.bf16.mxu1 %vm1649_vm0, %v1648_v0 }
  0x24   :  { %1471 = vmatpush3.bf16.msra.mxu1 %v1644_v38 }
  0x25   :  { %1472 = vmatprep.subr.bf16.mxu1 %v1648_v0 }
  0x28   :  { %1473 = vmatpush3.bf16.msra.mxu1 %v1645_v4 }
  0x2a   :  { %1399 = vmatmul.mubr.msk.bf16.gmra.mrb[16].mxu0 %vm107_vm1, %v69_v35  ;;  %1439 = vmatmul.mubr.msk.bf16.gmra.mrb[16].mxu1 %vm107_vm1, %v79_v39 }
  0x2b   :  { %1402 = vmatprep.mubr.msk.bf16.mxu0 %vm1649_vm0, %v1648_v0  ;;  %1442 = vmatprep.mubr.msk.bf16.mxu1 %vm1649_vm0, %v1648_v0 }
  0x32   :  { %1403 = vmatmul.mubr.msk.bf16.gmra.mrb[20].mxu0 %vm107_vm1, %v70_v42  ;;  %1443 = vmatmul.mubr.msk.bf16.gmra.mrb[20].mxu1 %vm107_vm1, %v80_v45 }
  0x33   :  { %1406 = vmatprep.mubr.msk.bf16.mxu0 %vm1649_vm0, %v1648_v0  ;;  %1446 = vmatprep.mubr.msk.bf16.mxu1 %vm1649_vm0, %v1648_v0 }
  0x3a   :  { %1407 = vmatmul.mubr.msk.bf16.gmra.mrb[24].mxu0 %vm107_vm1, %v71_v48  ;;  %1447 = vmatmul.mubr.msk.bf16.gmra.mrb[24].mxu1 %vm107_vm1, %v81_v51 }
  0x3b   :  { %1410 = vmatprep.mubr.msk.bf16.mxu0 %vm1649_vm0, %v1648_v0  ;;  %1450 = vmatprep.mubr.msk.bf16.mxu1 %vm1649_vm0, %v1648_v0 }
  0x42   :  { %1411 = vmatmul.mubr.msk.bf16.gmra.mrb[28].mxu0 %vm107_vm1, %v72_v54  ;;  %1451 = vmatmul.mubr.msk.bf16.gmra.mrb[28].mxu1 %vm107_vm1, %v82_v57 }
  0x43   :  { %1414 = vmatprep.mubr.msk.bf16.mxu0 %vm1649_vm0, %v1648_v0  ;;  %1454 = vmatprep.mubr.msk.bf16.mxu1 %vm1649_vm0, %v1648_v0 }
  0x4a   :  { %1415 = vmatmul.mubr.msk.bf16.gmra.mrb[32].mxu0 %vm107_vm1, %v73_v60  ;;  %1455 = vmatmul.mubr.msk.bf16.gmra.mrb[32].mxu1 %vm107_vm1, %v83_v63  ;;  %v1647_v63 = vld [vmem:[%s2309_s5 + $0x8] sm:$0xff]  }
  0x4b   :  { %1418 = vmatprep.mubr.msk.bf16.mxu0 %vm1649_vm0, %v1648_v0  ;;  %1474 = vmatprep.mubr.msk.bf16.mxu1 %vm1649_vm0, %v1648_v0 }
  0x4c   :  { %1553 = vmatpush3.bf16.msra.mxu0 %v1647_v63 }
  0x52   :  { %1419 = vmatmul.mubr.msk.bf16.gmra.mrb[36].mxu0 %vm107_vm1, %v74_v3 }
  0x53   :  { %1554 = vmatprep.mubr.msk.bf16.mxu0 %vm1649_vm0, %v1648_v0 }
  0xdd   :  { %v199_v6 = vpop.f32.mrb[0].mxu0  ;;  %v279_v12 = vpop.f32.mrb[0].mxu1 }
  0xde   :  { %v200_v7 = vadd.f32 %v1911_v5, %v199_v6  ;;  %v1384_v8 = vpop.f32.mrb[1].mxu0  ;;  %v280_v13 = vadd.f32 %v1911_v5, %v279_v12  ;;  %v1424_v14 = vpop.f32.mrb[1].mxu1 }
  0xdf   :  { %v202_v9 = vpop.f32.mrb[2].mxu0  ;;  %v282_v17 = vpop.f32.mrb[2].mxu1 }
  0xe0   :  { %v203_v10 = vadd.f32 %v1911_v5, %v202_v9  ;;  %v1385_v11 = vpop.f32.mrb[3].mxu0  ;;  %v350_v15 = vmax.f32 %v200_v7, 0.0  ;;  %v370_v18 = vmax.f32 %v280_v13, 0.0  ;;  %v283_v19 = vadd.f32 %v1911_v5, %v282_v17  ;;  %v1425_v20 = vpop.f32.mrb[3].mxu1 }
  0xe2   :  { %v351_v16 = vmax.f32 %v203_v10, 0.0  ;;  %v371_v23 = vmax.f32 %v283_v19, 0.0 }
  0xe4   :  { %v388_v21 = vpack.c.bf16 %v351_v16, %v350_v15  ;;  %v1920_v27 = vpack.c.bf16 %v371_v23, %v370_v18 }
  0xe5   :  { %v207_v22 = vpop.f32.mrb[4].mxu0  ;;  %v287_v30 = vpop.f32.mrb[4].mxu1 }
  0xe6   :  { %v208_v24 = vadd.f32 %v1911_v5, %v207_v22  ;;  %v1388_v25 = vpop.f32.mrb[5].mxu0  ;;  %1475 = vmatmul.mubr.bf16.vlgmr.msra.gmra.mrb[36].mxu1 %v388_v21  ;;  %v288_v31 = vadd.f32 %v1911_v5, %v287_v30  ;;  %v1428_v32 = vpop.f32.mrb[5].mxu1 }
  0xe7   :  { %v210_v26 = vpop.f32.mrb[6].mxu0  ;;  %1478 = vmatprep.mubr.msk.bf16.mxu1 %vm1649_vm0, %v1648_v0  ;;  %v290_v35 = vpop.f32.mrb[6].mxu1 }
  0xe8   :  { %v211_v28 = vadd.f32 %v1911_v5, %v210_v26  ;;  %v1389_v29 = vpop.f32.mrb[7].mxu0  ;;  %v352_v33 = vmax.f32 %v208_v24, 0.0  ;;  %v372_v36 = vmax.f32 %v288_v31, 0.0  ;;  %v291_v37 = vadd.f32 %v1911_v5, %v290_v35  ;;  %v1429_v38 = vpop.f32.mrb[7].mxu1 }
  0xea   :  { %v353_v34 = vmax.f32 %v211_v28, 0.0  ;;  %v373_v41 = vmax.f32 %v291_v37, 0.0 }
  0xec   :  { %v389_v39 = vpack.c.bf16 %v353_v34, %v352_v33  ;;  %v1928_v45 = vpack.c.bf16 %v373_v41, %v372_v36 }
  0xed   :  { %v215_v40 = vpop.f32.mrb[8].mxu0  ;;  %v295_v49 = vpop.f32.mrb[8].mxu1 }
  0xee   :  { %v216_v42 = vadd.f32 %v1911_v5, %v215_v40  ;;  %v1392_v43 = vpop.f32.mrb[9].mxu0  ;;  %1479 = vmatmul.mubr.bf16.gmra.mrb[40].mxu1 %v389_v39  ;;  %v296_v50 = vadd.f32 %v1911_v5, %v295_v49  ;;  %v1432_v51 = vpop.f32.mrb[9].mxu1 }
  0xef   :  { %v218_v44 = vpop.f32.mrb[10].mxu0  ;;  %1482 = vmatprep.mubr.msk.bf16.mxu1 %vm1649_vm0, %v1648_v0  ;;  %v298_v54 = vpop.f32.mrb[10].mxu1 }
  0xf0   :  { %v219_v47 = vadd.f32 %v1911_v5, %v218_v44  ;;  %v1393_v48 = vpop.f32.mrb[11].mxu0  ;;  %v354_v52 = vmax.f32 %v216_v42, 0.0  ;;  %v374_v55 = vmax.f32 %v296_v50, 0.0  ;;  %v299_v56 = vadd.f32 %v1911_v5, %v298_v54  ;;  %v1433_v57 = vpop.f32.mrb[11].mxu1 }
  0xf2   :  { %v355_v53 = vmax.f32 %v219_v47, 0.0  ;;  %v375_v60 = vmax.f32 %v299_v56, 0.0 }
  0xf4   :  { %v390_v58 = vpack.c.bf16 %v355_v53, %v354_v52  ;;  %v1943_v2 = vpack.c.bf16 %v375_v60, %v374_v55 }
  0xf5   :  { %v223_v59 = vpop.f32.mrb[12].mxu0  ;;  %v303_v6 = vpop.f32.mrb[12].mxu1 }
  0xf6   :  { %v224_v61 = vadd.f32 %v1911_v5, %v223_v59  ;;  %v1396_v62 = vpop.f32.mrb[13].mxu0  ;;  %1483 = vmatmul.mubr.bf16.gmra.mrb[44].mxu1 %v390_v58  ;;  %v304_v7 = vadd.f32 %v1911_v5, %v303_v6  ;;  %v1436_v8 = vpop.f32.mrb[13].mxu1 }
  0xf7   :  { %v226_v1 = vpop.f32.mrb[14].mxu0  ;;  %1486 = vmatprep.mubr.msk.bf16.mxu1 %vm1649_vm0, %v1648_v0  ;;  %v306_v11 = vpop.f32.mrb[14].mxu1 }
  0xf8   :  { %v227_v3 = vadd.f32 %v1911_v5, %v226_v1  ;;  %v1397_v4 = vpop.f32.mrb[15].mxu0  ;;  %v356_v9 = vmax.f32 %v224_v61, 0.0  ;;  %v376_v12 = vmax.f32 %v304_v7, 0.0  ;;  %v307_v13 = vadd.f32 %v1911_v5, %v306_v11  ;;  %v1437_v14 = vpop.f32.mrb[15].mxu1 }
  0xfa   :  { %v357_v10 = vmax.f32 %v227_v3, 0.0  ;;  %v377_v17 = vmax.f32 %v307_v13, 0.0 }
  0xfc   :  { %v391_v15 = vpack.c.bf16 %v357_v10, %v356_v9  ;;  %v1951_v21 = vpack.c.bf16 %v377_v17, %v376_v12 }
  0xfd   :  { %v231_v16 = vpop.f32.mrb[16].mxu0  ;;  %v311_v24 = vpop.f32.mrb[16].mxu1 }
  0xfe   :  { %v232_v18 = vadd.f32 %v1911_v5, %v231_v16  ;;  %v1400_v19 = vpop.f32.mrb[17].mxu0  ;;  %1487 = vmatmul.mubr.bf16.gmra.mrb[48].mxu1 %v391_v15  ;;  %v312_v25 = vadd.f32 %v1911_v5, %v311_v24  ;;  %v1440_v26 = vpop.f32.mrb[17].mxu1 }
  0xff   :  { %v234_v20 = vpop.f32.mrb[18].mxu0  ;;  %1490 = vmatprep.mubr.msk.bf16.mxu1 %vm1649_vm0, %v1648_v0  ;;  %v314_v30 = vpop.f32.mrb[18].mxu1 }
 0x100   :  { %v235_v22 = vadd.f32 %v1911_v5, %v234_v20  ;;  %v1401_v23 = vpop.f32.mrb[19].mxu0  ;;  %v358_v28 = vmax.f32 %v232_v18, 0.0  ;;  %v378_v31 = vmax.f32 %v312_v25, 0.0  ;;  %v315_v32 = vadd.f32 %v1911_v5, %v314_v30  ;;  %v1441_v33 = vpop.f32.mrb[19].mxu1 }
 0x102   :  { %v359_v29 = vmax.f32 %v235_v22, 0.0  ;;  %v379_v36 = vmax.f32 %v315_v32, 0.0 }
 0x104   :  { %v392_v34 = vpack.c.bf16 %v359_v29, %v358_v28  ;;  %v1959_v40 = vpack.c.bf16 %v379_v36, %v378_v31 }
 0x105   :  { %v239_v35 = vpop.f32.mrb[20].mxu0  ;;  %v319_v43 = vpop.f32.mrb[20].mxu1 }
 0x106   :  { %v240_v37 = vadd.f32 %v1911_v5, %v239_v35  ;;  %v1404_v38 = vpop.f32.mrb[21].mxu0  ;;  %1491 = vmatmul.mubr.bf16.gmra.mrb[52].mxu1 %v392_v34  ;;  %v320_v44 = vadd.f32 %v1911_v5, %v319_v43  ;;  %v1444_v46 = vpop.f32.mrb[21].mxu1 }
 0x107   :  { %v242_v39 = vpop.f32.mrb[22].mxu0  ;;  %1494 = vmatprep.mubr.msk.bf16.mxu1 %vm1649_vm0, %v1648_v0  ;;  %v322_v49 = vpop.f32.mrb[22].mxu1 }
 0x108   :  { %v243_v41 = vadd.f32 %v1911_v5, %v242_v39  ;;  %v1405_v42 = vpop.f32.mrb[23].mxu0  ;;  %v360_v47 = vmax.f32 %v240_v37, 0.0  ;;  %v380_v50 = vmax.f32 %v320_v44, 0.0  ;;  %v323_v51 = vadd.f32 %v1911_v5, %v322_v49  ;;  %v1445_v52 = vpop.f32.mrb[23].mxu1 }
 0x10a   :  { %v361_v48 = vmax.f32 %v243_v41, 0.0  ;;  %v381_v55 = vmax.f32 %v323_v51, 0.0 }
 0x10c   :  { %v393_v53 = vpack.c.bf16 %v361_v48, %v360_v47  ;;  %v1967_v59 = vpack.c.bf16 %v381_v55, %v380_v50 }
 0x10d   :  { %v247_v54 = vpop.f32.mrb[24].mxu0  ;;  %v327_v62 = vpop.f32.mrb[24].mxu1 }
 0x10e   :  { %v248_v56 = vadd.f32 %v1911_v5, %v247_v54  ;;  %v1408_v57 = vpop.f32.mrb[25].mxu0  ;;  %1495 = vmatmul.mubr.bf16.gmra.mrb[56].mxu1 %v393_v53  ;;  %v328_v63 = vadd.f32 %v1911_v5, %v327_v62  ;;  %v1448_v1 = vpop.f32.mrb[25].mxu1 }
 0x10f   :  { %v250_v58 = vpop.f32.mrb[26].mxu0  ;;  %1498 = vmatprep.mubr.msk.bf16.mxu1 %vm1649_vm0, %v1648_v0  ;;  %v330_v6 = vpop.f32.mrb[26].mxu1 }
 0x110   :  { %v251_v60 = vadd.f32 %v1911_v5, %v250_v58  ;;  %v1409_v61 = vpop.f32.mrb[27].mxu0  ;;  %v362_v3 = vmax.f32 %v248_v56, 0.0  ;;  %v382_v7 = vmax.f32 %v328_v63, 0.0  ;;  %v331_v8 = vadd.f32 %v1911_v5, %v330_v6  ;;  %v1449_v9 = vpop.f32.mrb[27].mxu1 }
 0x112   :  { %v363_v4 = vmax.f32 %v251_v60, 0.0  ;;  %v383_v12 = vmax.f32 %v331_v8, 0.0 }
 0x114   :  { %v394_v10 = vpack.c.bf16 %v363_v4, %v362_v3  ;;  %v404_v16 = vpack.c.bf16 %v383_v12, %v382_v7 }
 0x115   :  { %v255_v11 = vpop.f32.mrb[28].mxu0  ;;  %v335_v19 = vpop.f32.mrb[28].mxu1 }
 0x116   :  { %v256_v13 = vadd.f32 %v1911_v5, %v255_v11  ;;  %v1412_v14 = vpop.f32.mrb[29].mxu0  ;;  %1499 = vmatmul.mubr.bf16.gmra.mrb[60].mxu1 %v394_v10  ;;  %v336_v20 = vadd.f32 %v1911_v5, %v335_v19  ;;  %v1452_v22 = vpop.f32.mrb[29].mxu1 }
 0x117   :  { %v258_v15 = vpop.f32.mrb[30].mxu0  ;;  %1502 = vmatprep.mubr.msk.bf16.mxu1 %vm1649_vm0, %v1648_v0  ;;  %v338_v25 = vpop.f32.mrb[30].mxu1 }
 0x118   :  { %v259_v17 = vadd.f32 %v1911_v5, %v258_v15  ;;  %v1413_v18 = vpop.f32.mrb[31].mxu0  ;;  %v364_v23 = vmax.f32 %v256_v13, 0.0  ;;  %v384_v26 = vmax.f32 %v336_v20, 0.0  ;;  %v339_v28 = vadd.f32 %v1911_v5, %v338_v25  ;;  %v1453_v29 = vpop.f32.mrb[31].mxu1 }
 0x11a   :  { %v365_v24 = vmax.f32 %v259_v17, 0.0  ;;  %v385_v32 = vmax.f32 %v339_v28, 0.0 }
 0x11c   :  { %v395_v30 = vpack.c.bf16 %v365_v24, %v364_v23  ;;  %v405_v36 = vpack.c.bf16 %v385_v32, %v384_v26 }
 0x11d   :  { %v263_v31 = vpop.f32.mrb[32].mxu0  ;;  %v343_v39 = vpop.f32.mrb[32].mxu1 }
 0x11e   :  { %v264_v33 = vadd.f32 %v1911_v5, %v263_v31  ;;  %v1416_v34 = vpop.f32.mrb[33].mxu0  ;;  %1503 = vmatmul.mubr.bf16.gmra.mrb[64].mxu1 %v395_v30  ;;  %v344_v41 = vadd.f32 %v1911_v5, %v343_v39  ;;  %v1456_v42 = vpop.f32.mrb[33].mxu1 }
 0x11f   :  { %v266_v35 = vpop.f32.mrb[34].mxu0  ;;  %1506 = vmatprep.mubr.msk.bf16.mxu1 %vm1649_vm0, %v1648_v0  ;;  %v346_v46 = vpop.f32.mrb[34].mxu1 }
 0x120   :  { %v267_v37 = vadd.f32 %v1911_v5, %v266_v35  ;;  %v1417_v38 = vpop.f32.mrb[35].mxu0  ;;  %v366_v43 = vmax.f32 %v264_v33, 0.0  ;;  %v386_v47 = vmax.f32 %v344_v41, 0.0  ;;  %v347_v48 = vadd.f32 %v1911_v5, %v346_v46  ;;  %v1457_v49 = vpop.f32.mrb[35].mxu1 }
 0x122   :  { %v367_v44 = vmax.f32 %v267_v37, 0.0  ;;  %v387_v52 = vmax.f32 %v347_v48, 0.0 }
 0x124   :  { %v396_v50 = vpack.c.bf16 %v367_v44, %v366_v43  ;;  %v406_v56 = vpack.c.bf16 %v387_v52, %v386_v47 }
 0x125   :  { %v271_v51 = vpop.f32.mrb[36].mxu0 }
 0x126   :  { %v272_v53 = vadd.f32 %v1911_v5, %v271_v51  ;;  %v1420_v54 = vpop.f32.mrb[37].mxu0  ;;  %1507 = vmatmul.mubr.bf16.gmra.mrb[68].mxu1 %v396_v50 }
 0x127   :  { %v274_v55 = vpop.f32.mrb[38].mxu0  ;;  %1510 = vmatprep.mubr.msk.bf16.mxu1 %vm1649_vm0, %v1648_v0 }
 0x128   :  { %v275_v57 = vadd.f32 %v1911_v5, %v274_v55  ;;  %v1421_v58 = vpop.f32.mrb[39].mxu0  ;;  %v368_v60 = vmax.f32 %v272_v53, 0.0  ;;  %v2015_v5 = vld [vmem:[%s2310_s4] ss:$0 sm:$0xff] }
 0x12a   :  { %v369_v61 = vmax.f32 %v275_v57, 0.0 }
 0x12c   :  { %v397_v62 = vpack.c.bf16 %v369_v61, %v368_v60 }
 0x12e   :  { %1511 = vmatmul.mubr.bf16.gmra.mrb[72].mxu1 %v397_v62 }
 0x12f   :  { %1514 = vmatprep.mubr.msk.bf16.mxu1 %vm1649_vm0, %v1648_v0 }
 0x136   :  { %1515 = vmatmul.mubr.bf16.gmra.mrb[76].mxu1 %v1920_v27 }
 0x137   :  { %1518 = vmatprep.mubr.msk.bf16.mxu1 %vm1649_vm0, %v1648_v0 }
 0x13e   :  { %1519 = vmatmul.mubr.bf16.gmra.mrb[80].mxu1 %v1928_v45 }
 0x13f   :  { %1522 = vmatprep.mubr.msk.bf16.mxu1 %vm1649_vm0, %v1648_v0 }
 0x146   :  { %1523 = vmatmul.mubr.bf16.gmra.mrb[84].mxu1 %v1943_v2 }
 0x147   :  { %1526 = vmatprep.mubr.msk.bf16.mxu1 %vm1649_vm0, %v1648_v0 }
 0x14e   :  { %1527 = vmatmul.mubr.bf16.gmra.mrb[88].mxu1 %v1951_v21 }
 0x14f   :  { %1530 = vmatprep.mubr.msk.bf16.mxu1 %vm1649_vm0, %v1648_v0 }
 0x156   :  { %1531 = vmatmul.mubr.bf16.gmra.mrb[92].mxu1 %v1959_v40 }
 0x157   :  { %1534 = vmatprep.mubr.msk.bf16.mxu1 %vm1649_vm0, %v1648_v0 }
 0x15e   :  { %1535 = vmatmul.mubr.bf16.gmra.mrb[96].mxu1 %v1967_v59 }
 0x15f   :  { %1538 = vmatprep.mubr.msk.bf16.mxu1 %vm1649_vm0, %v1648_v0 }
 0x166   :  { %1539 = vmatmul.mubr.bf16.gmra.mrb[100].mxu1 %v404_v16 }
 0x167   :  { %1542 = vmatprep.mubr.msk.bf16.mxu1 %vm1649_vm0, %v1648_v0 }
 0x16e   :  { %1543 = vmatmul.mubr.bf16.gmra.mrb[104].mxu1 %v405_v36 }
 0x16f   :  { %1546 = vmatprep.mubr.msk.bf16.mxu1 %vm1649_vm0, %v1648_v0 }
 0x176   :  { %1547 = vmatmul.mubr.bf16.gmra.mrb[108].mxu1 %v406_v56 }
 0x1b9   :  { %v512_v27 = vpop.f32.mrb[36].mxu1 }
 0x1ba   :  { %v513_v45 = vadd.f32 %v2015_v5, %v512_v27  ;;  %v1476_v2 = vpop.f32.mrb[37].mxu1 }
 0x1bb   :  { %v515_v21 = vpop.f32.mrb[38].mxu1 }
 0x1bc   :  { %v516_v40 = vadd.f32 %v2015_v5, %v515_v21  ;;  %v1477_v59 = vpop.f32.mrb[39].mxu1  ;;  %v663_v63 = vmax.f32 %v513_v45, 0.0 }
 0x1be   :  { %v664_v1 = vmax.f32 %v516_v40, 0.0 }
 0x1c0   :  { %v701_v3 = vpack.c.bf16 %v664_v1, %v663_v63 }
 0x1c1   :  { %v520_v4 = vpop.f32.mrb[40].mxu1 }
 0x1c2   :  { %v521_v6 = vadd.f32 %v2015_v5, %v520_v4  ;;  %v1480_v7 = vpop.f32.mrb[41].mxu1  ;;  %1555 = vmatmul.mubr.msk.bf16.vlgmr.msra.gmra.mrb[40].mxu0 %vm107_vm1, %v701_v3 }
 0x1c3   :  { %v523_v8 = vpop.f32.mrb[42].mxu1  ;;  %1558 = vmatprep.mubr.msk.bf16.mxu0 %vm1649_vm0, %v1648_v0 }
 0x1c4   :  { %v524_v9 = vadd.f32 %v2015_v5, %v523_v8  ;;  %v1481_v10 = vpop.f32.mrb[43].mxu1  ;;  %v665_v11 = vmax.f32 %v521_v6, 0.0 }
 0x1c6   :  { %v666_v12 = vmax.f32 %v524_v9, 0.0 }
 0x1c8   :  { %v702_v13 = vpack.c.bf16 %v666_v12, %v665_v11 }
 0x1c9   :  { %v528_v14 = vpop.f32.mrb[44].mxu1 }
 0x1ca   :  { %v529_v15 = vadd.f32 %v2015_v5, %v528_v14  ;;  %v1484_v16 = vpop.f32.mrb[45].mxu1  ;;  %1559 = vmatmul.mubr.msk.bf16.gmra.mrb[44].mxu0 %vm107_vm1, %v702_v13 }
 0x1cb   :  { %v531_v17 = vpop.f32.mrb[46].mxu1  ;;  %1562 = vmatprep.mubr.msk.bf16.mxu0 %vm1649_vm0, %v1648_v0 }
 0x1cc   :  { %v532_v18 = vadd.f32 %v2015_v5, %v531_v17  ;;  %v1485_v19 = vpop.f32.mrb[47].mxu1  ;;  %v667_v20 = vmax.f32 %v529_v15, 0.0 }
 0x1ce   :  { %v668_v22 = vmax.f32 %v532_v18, 0.0 }
 0x1d0   :  { %v703_v23 = vpack.c.bf16 %v668_v22, %v667_v20 }
 0x1d1   :  { %v536_v24 = vpop.f32.mrb[48].mxu1 }
 0x1d2   :  { %v537_v25 = vadd.f32 %v2015_v5, %v536_v24  ;;  %v1488_v26 = vpop.f32.mrb[49].mxu1  ;;  %1563 = vmatmul.mubr.msk.bf16.gmra.mrb[48].mxu0 %vm107_vm1, %v703_v23 }
 0x1d3   :  { %v539_v28 = vpop.f32.mrb[50].mxu1  ;;  %1566 = vmatprep.mubr.msk.bf16.mxu0 %vm1649_vm0, %v1648_v0 }
 0x1d4   :  { %v540_v29 = vadd.f32 %v2015_v5, %v539_v28  ;;  %v1489_v30 = vpop.f32.mrb[51].mxu1  ;;  %v669_v31 = vmax.f32 %v537_v25, 0.0 }
 0x1d6   :  { %v670_v32 = vmax.f32 %v540_v29, 0.0 }
 0x1d8   :  { %v704_v33 = vpack.c.bf16 %v670_v32, %v669_v31 }
 0x1d9   :  { %v544_v34 = vpop.f32.mrb[52].mxu1 }
 0x1da   :  { %v545_v35 = vadd.f32 %v2015_v5, %v544_v34  ;;  %v1492_v36 = vpop.f32.mrb[53].mxu1  ;;  %1567 = vmatmul.mubr.msk.bf16.gmra.mrb[52].mxu0 %vm107_vm1, %v704_v33 }
 0x1db   :  { %v547_v37 = vpop.f32.mrb[54].mxu1  ;;  %1570 = vmatprep.mubr.msk.bf16.mxu0 %vm1649_vm0, %v1648_v0 }
 0x1dc   :  { %v548_v38 = vadd.f32 %v2015_v5, %v547_v37  ;;  %v1493_v39 = vpop.f32.mrb[55].mxu1  ;;  %v671_v41 = vmax.f32 %v545_v35, 0.0 }
 0x1de   :  { %v672_v42 = vmax.f32 %v548_v38, 0.0 }
 0x1e0   :  { %v705_v43 = vpack.c.bf16 %v672_v42, %v671_v41 }
 0x1e1   :  { %v552_v44 = vpop.f32.mrb[56].mxu1 }
 0x1e2   :  { %v553_v46 = vadd.f32 %v2015_v5, %v552_v44  ;;  %v1496_v47 = vpop.f32.mrb[57].mxu1  ;;  %1571 = vmatmul.mubr.msk.bf16.gmra.mrb[56].mxu0 %vm107_vm1, %v705_v43 }
 0x1e3   :  { %v555_v48 = vpop.f32.mrb[58].mxu1  ;;  %1574 = vmatprep.mubr.msk.bf16.mxu0 %vm1649_vm0, %v1648_v0 }
 0x1e4   :  { %v556_v49 = vadd.f32 %v2015_v5, %v555_v48  ;;  %v1497_v50 = vpop.f32.mrb[59].mxu1  ;;  %v673_v51 = vmax.f32 %v553_v46, 0.0 }
 0x1e6   :  { %v674_v52 = vmax.f32 %v556_v49, 0.0 }
 0x1e8   :  { %v706_v53 = vpack.c.bf16 %v674_v52, %v673_v51 }
 0x1e9   :  { %v560_v54 = vpop.f32.mrb[60].mxu1 }
 0x1ea   :  { %v561_v55 = vadd.f32 %v2015_v5, %v560_v54  ;;  %v1500_v56 = vpop.f32.mrb[61].mxu1  ;;  %1575 = vmatmul.mubr.msk.bf16.gmra.mrb[60].mxu0 %vm107_vm1, %v706_v53 }
 0x1eb   :  { %v563_v57 = vpop.f32.mrb[62].mxu1  ;;  %1578 = vmatprep.mubr.msk.bf16.mxu0 %vm1649_vm0, %v1648_v0 }
 0x1ec   :  { %v564_v58 = vadd.f32 %v2015_v5, %v563_v57  ;;  %v1501_v60 = vpop.f32.mrb[63].mxu1  ;;  %v675_v61 = vmax.f32 %v561_v55, 0.0 }
 0x1ee   :  { %v676_v62 = vmax.f32 %v564_v58, 0.0 }
 0x1f0   :  { %v707_v27 = vpack.c.bf16 %v676_v62, %v675_v61 }
 0x1f1   :  { %v568_v45 = vpop.f32.mrb[64].mxu1 }
 0x1f2   :  { %v569_v2 = vadd.f32 %v2015_v5, %v568_v45  ;;  %v1504_v21 = vpop.f32.mrb[65].mxu1  ;;  %1579 = vmatmul.mubr.msk.bf16.gmra.mrb[64].mxu0 %vm107_vm1, %v707_v27 }
 0x1f3   :  { %v571_v40 = vpop.f32.mrb[66].mxu1  ;;  %1582 = vmatprep.mubr.msk.bf16.mxu0 %vm1649_vm0, %v1648_v0 }
 0x1f4   :  { %v572_v59 = vadd.f32 %v2015_v5, %v571_v40  ;;  %v1505_v63 = vpop.f32.mrb[67].mxu1  ;;  %v677_v1 = vmax.f32 %v569_v2, 0.0 }
 0x1f6   :  { %v678_v3 = vmax.f32 %v572_v59, 0.0 }
 0x1f8   :  { %v708_v4 = vpack.c.bf16 %v678_v3, %v677_v1 }
 0x1f9   :  { %v576_v6 = vpop.f32.mrb[68].mxu1 }
 0x1fa   :  { %v577_v7 = vadd.f32 %v2015_v5, %v576_v6  ;;  %v1508_v8 = vpop.f32.mrb[69].mxu1  ;;  %1583 = vmatmul.mubr.msk.bf16.gmra.mrb[68].mxu0 %vm107_vm1, %v708_v4 }
 0x1fb   :  { %v579_v9 = vpop.f32.mrb[70].mxu1  ;;  %1586 = vmatprep.mubr.msk.bf16.mxu0 %vm1649_vm0, %v1648_v0 }
 0x1fc   :  { %v580_v10 = vadd.f32 %v2015_v5, %v579_v9  ;;  %v1509_v11 = vpop.f32.mrb[71].mxu1  ;;  %v679_v12 = vmax.f32 %v577_v7, 0.0 }
 0x1fe   :  { %v680_v13 = vmax.f32 %v580_v10, 0.0 }
 0x200   :  { %v709_v14 = vpack.c.bf16 %v680_v13, %v679_v12 }
 0x201   :  { %v584_v15 = vpop.f32.mrb[72].mxu1 }
 0x202   :  { %v585_v16 = vadd.f32 %v2015_v5, %v584_v15  ;;  %v1512_v17 = vpop.f32.mrb[73].mxu1  ;;  %1587 = vmatmul.mubr.msk.bf16.gmra.mrb[72].mxu0 %vm107_vm1, %v709_v14 }
 0x203   :  { %v587_v18 = vpop.f32.mrb[74].mxu1  ;;  %1590 = vmatprep.mubr.msk.bf16.mxu0 %vm1649_vm0, %v1648_v0 }
 0x204   :  { %v588_v19 = vadd.f32 %v2015_v5, %v587_v18  ;;  %v1513_v20 = vpop.f32.mrb[75].mxu1  ;;  %v681_v22 = vmax.f32 %v585_v16, 0.0 }
 0x206   :  { %v682_v23 = vmax.f32 %v588_v19, 0.0 }
 0x208   :  { %v710_v24 = vpack.c.bf16 %v682_v23, %v681_v22 }
 0x209   :  { %v592_v25 = vpop.f32.mrb[76].mxu1 }
 0x20a   :  { %v593_v26 = vadd.f32 %v2015_v5, %v592_v25  ;;  %v1516_v28 = vpop.f32.mrb[77].mxu1  ;;  %1591 = vmatmul.mubr.msk.bf16.gmra.mrb[76].mxu0 %vm107_vm1, %v710_v24 }
 0x20b   :  { %v595_v29 = vpop.f32.mrb[78].mxu1  ;;  %1594 = vmatprep.mubr.msk.bf16.mxu0 %vm1649_vm0, %v1648_v0 }
 0x20c   :  { %v596_v30 = vadd.f32 %v2015_v5, %v595_v29  ;;  %v1517_v31 = vpop.f32.mrb[79].mxu1  ;;  %v683_v32 = vmax.f32 %v593_v26, 0.0 }
 0x20e   :  { %v684_v33 = vmax.f32 %v596_v30, 0.0 }
 0x210   :  { %v711_v34 = vpack.c.bf16 %v684_v33, %v683_v32 }
 0x211   :  { %v600_v35 = vpop.f32.mrb[80].mxu1 }
 0x212   :  { %v601_v36 = vadd.f32 %v2015_v5, %v600_v35  ;;  %v1520_v37 = vpop.f32.mrb[81].mxu1  ;;  %1595 = vmatmul.mubr.msk.bf16.gmra.mrb[80].mxu0 %vm107_vm1, %v711_v34 }
 0x213   :  { %v603_v38 = vpop.f32.mrb[82].mxu1  ;;  %1598 = vmatprep.mubr.msk.bf16.mxu0 %vm1649_vm0, %v1648_v0 }
 0x214   :  { %v604_v39 = vadd.f32 %v2015_v5, %v603_v38  ;;  %v1521_v41 = vpop.f32.mrb[83].mxu1  ;;  %v685_v42 = vmax.f32 %v601_v36, 0.0 }
 0x216   :  { %v686_v43 = vmax.f32 %v604_v39, 0.0 }
 0x218   :  { %v712_v44 = vpack.c.bf16 %v686_v43, %v685_v42 }
 0x219   :  { %v608_v46 = vpop.f32.mrb[84].mxu1 }
 0x21a   :  { %v609_v47 = vadd.f32 %v2015_v5, %v608_v46  ;;  %v1524_v48 = vpop.f32.mrb[85].mxu1  ;;  %1599 = vmatmul.mubr.msk.bf16.gmra.mrb[84].mxu0 %vm107_vm1, %v712_v44 }
 0x21b   :  { %v611_v49 = vpop.f32.mrb[86].mxu1  ;;  %1602 = vmatprep.mubr.msk.bf16.mxu0 %vm1649_vm0, %v1648_v0 }
 0x21c   :  { %v612_v50 = vadd.f32 %v2015_v5, %v611_v49  ;;  %v1525_v51 = vpop.f32.mrb[87].mxu1  ;;  %v687_v52 = vmax.f32 %v609_v47, 0.0  ;;  %v2113_v47 = vld [vmem:[%s2311_s6] ss:$0 sm:$0xff] }
 0x21e   :  { %v688_v53 = vmax.f32 %v612_v50, 0.0 }
 0x220   :  { %v713_v54 = vpack.c.bf16 %v688_v53, %v687_v52 }
 0x221   :  { %v616_v55 = vpop.f32.mrb[88].mxu1 }
 0x222   :  { %v617_v56 = vadd.f32 %v2015_v5, %v616_v55  ;;  %v1528_v57 = vpop.f32.mrb[89].mxu1  ;;  %1603 = vmatmul.mubr.msk.bf16.gmra.mrb[88].mxu0 %vm107_vm1, %v713_v54 }
 0x223   :  { %v619_v58 = vpop.f32.mrb[90].mxu1  ;;  %1606 = vmatprep.mubr.msk.bf16.mxu0 %vm1649_vm0, %v1648_v0 }
 0x224   :  { %v620_v60 = vadd.f32 %v2015_v5, %v619_v58  ;;  %v1529_v61 = vpop.f32.mrb[91].mxu1  ;;  %v689_v62 = vmax.f32 %v617_v56, 0.0 }
 0x226   :  { %v690_v27 = vmax.f32 %v620_v60, 0.0 }
 0x228   :  { %v714_v45 = vpack.c.bf16 %v690_v27, %v689_v62 }
 0x229   :  { %v624_v2 = vpop.f32.mrb[92].mxu1 }
 0x22a   :  { %v625_v21 = vadd.f32 %v2015_v5, %v624_v2  ;;  %v1532_v40 = vpop.f32.mrb[93].mxu1  ;;  %1607 = vmatmul.mubr.msk.bf16.gmra.mrb[92].mxu0 %vm107_vm1, %v714_v45 }
 0x22b   :  { %v627_v59 = vpop.f32.mrb[94].mxu1  ;;  %1610 = vmatprep.mubr.msk.bf16.mxu0 %vm1649_vm0, %v1648_v0 }
 0x22c   :  { %v628_v63 = vadd.f32 %v2015_v5, %v627_v59  ;;  %v1533_v1 = vpop.f32.mrb[95].mxu1  ;;  %v691_v3 = vmax.f32 %v625_v21, 0.0 }
 0x22e   :  { %v692_v4 = vmax.f32 %v628_v63, 0.0 }
 0x230   :  { %v715_v6 = vpack.c.bf16 %v692_v4, %v691_v3 }
 0x231   :  { %v632_v7 = vpop.f32.mrb[96].mxu1 }
 0x232   :  { %v633_v8 = vadd.f32 %v2015_v5, %v632_v7  ;;  %v1536_v9 = vpop.f32.mrb[97].mxu1  ;;  %1611 = vmatmul.mubr.msk.bf16.gmra.mrb[96].mxu0 %vm107_vm1, %v715_v6 }
 0x233   :  { %v635_v10 = vpop.f32.mrb[98].mxu1  ;;  %1614 = vmatprep.mubr.msk.bf16.mxu0 %vm1649_vm0, %v1648_v0 }
 0x234   :  { %v636_v11 = vadd.f32 %v2015_v5, %v635_v10  ;;  %v1537_v12 = vpop.f32.mrb[99].mxu1  ;;  %v693_v13 = vmax.f32 %v633_v8, 0.0 }
 0x236   :  { %v694_v14 = vmax.f32 %v636_v11, 0.0 }
 0x238   :  { %v716_v15 = vpack.c.bf16 %v694_v14, %v693_v13 }
 0x239   :  { %v640_v16 = vpop.f32.mrb[100].mxu1 }
 0x23a   :  { %v641_v17 = vadd.f32 %v2015_v5, %v640_v16  ;;  %v1540_v18 = vpop.f32.mrb[101].mxu1  ;;  %1615 = vmatmul.mubr.msk.bf16.gmra.mrb[100].mxu0 %vm107_vm1, %v716_v15 }
 0x23b   :  { %v643_v19 = vpop.f32.mrb[102].mxu1  ;;  %1618 = vmatprep.mubr.msk.bf16.mxu0 %vm1649_vm0, %v1648_v0 }
 0x23c   :  { %v644_v20 = vadd.f32 %v2015_v5, %v643_v19  ;;  %v1541_v22 = vpop.f32.mrb[103].mxu1  ;;  %v695_v23 = vmax.f32 %v641_v17, 0.0 }
 0x23e   :  { %v696_v24 = vmax.f32 %v644_v20, 0.0 }
 0x240   :  { %v717_v25 = vpack.c.bf16 %v696_v24, %v695_v23 }
 0x241   :  { %v648_v26 = vpop.f32.mrb[104].mxu1 }
 0x242   :  { %v649_v28 = vadd.f32 %v2015_v5, %v648_v26  ;;  %v1544_v29 = vpop.f32.mrb[105].mxu1  ;;  %1619 = vmatmul.mubr.msk.bf16.gmra.mrb[104].mxu0 %vm107_vm1, %v717_v25 }
 0x243   :  { %v651_v30 = vpop.f32.mrb[106].mxu1  ;;  %1622 = vmatprep.mubr.msk.bf16.mxu0 %vm1649_vm0, %v1648_v0 }
 0x244   :  { %v652_v31 = vadd.f32 %v2015_v5, %v651_v30  ;;  %v1545_v32 = vpop.f32.mrb[107].mxu1  ;;  %v697_v33 = vmax.f32 %v649_v28, 0.0 }
 0x246   :  { %v698_v34 = vmax.f32 %v652_v31, 0.0 }
 0x248   :  { %v718_v35 = vpack.c.bf16 %v698_v34, %v697_v33 }
 0x249   :  { %v656_v36 = vpop.f32.mrb[108].mxu1 }
 0x24a   :  { %v657_v37 = vadd.f32 %v2015_v5, %v656_v36  ;;  %v1548_v38 = vpop.f32.mrb[109].mxu1  ;;  %1623 = vmatmul.mubr.msk.bf16.gmra.mrb[108].mxu0 %vm107_vm1, %v718_v35 }
 0x24b   :  { %v659_v39 = vpop.f32.mrb[110].mxu1  ;;  %1626 = vmatprep.mubr.msk.bf16.mxu0 %vm1649_vm0, %v1648_v0 }
 0x24c   :  { %v660_v41 = vadd.f32 %v2015_v5, %v659_v39  ;;  %v1549_v42 = vpop.f32.mrb[111].mxu1  ;;  %v699_v43 = vmax.f32 %v657_v37, 0.0 }
 0x24e   :  { %v700_v44 = vmax.f32 %v660_v41, 0.0 }
 0x250   :  { %v719_v46 = vpack.c.bf16 %v700_v44, %v699_v43 }
 0x252   :  { %1627 = vmatmul.mubr.msk.bf16.gmra.mrb[112].mxu0 %vm107_vm1, %v719_v46 }
 0x295   :  { %v834_v48 = vpop.f32.mrb[40].mxu0 }
 0x296   :  { %v835_v49 = vadd.f32 %v2113_v47, %v834_v48  ;;  %v1556_v50 = vpop.f32.mrb[41].mxu0 }
 0x297   :  { %v837_v51 = vpop.f32.mrb[42].mxu0 }
 0x298   :  { %v1271_v0 = vpack.c.bf16 %v835_v49, %v835_v49  ;;  %v838_v5 = vadd.f32 %v2113_v47, %v837_v51  ;;  %v1557_v52 = vpop.f32.mrb[43].mxu0 }
 0x29a   :  { %1138 = vst.msk [vmem:[%s2312_s7] sm:$0xf] %vm1137_vm2, %v1271_v0  ;;  %v1272_v53 = vpack.c.bf16 %v838_v5, %v838_v5 }
 0x29c   :  { %1139 = vst.msk [vmem:[%s2312_s7 + $0x4] sm:$0xf] %vm1137_vm2, %v1272_v53 }
 0x29d   :  { %v842_v54 = vpop.f32.mrb[44].mxu0 }
 0x29e   :  { %v843_v55 = vadd.f32 %v2113_v47, %v842_v54  ;;  %v1560_v56 = vpop.f32.mrb[45].mxu0 }
 0x29f   :  { %v845_v57 = vpop.f32.mrb[46].mxu0 }
 0x2a0   :  { %v1273_v58 = vpack.c.bf16 %v843_v55, %v843_v55  ;;  %v846_v60 = vadd.f32 %v2113_v47, %v845_v57  ;;  %v1561_v61 = vpop.f32.mrb[47].mxu0 }
 0x2a2   :  { %1140 = vst.msk [vmem:[%s2312_s7 + $0x8] sm:$0xf] %vm1137_vm2, %v1273_v58  ;;  %v1274_v62 = vpack.c.bf16 %v846_v60, %v846_v60 }
 0x2a4   :  { %1141 = vst.msk [vmem:[%s2312_s7 + $0xc] sm:$0xf] %vm1137_vm2, %v1274_v62 }
 0x2a5   :  { %v850_v27 = vpop.f32.mrb[48].mxu0 }
 0x2a6   :  { %v851_v45 = vadd.f32 %v2113_v47, %v850_v27  ;;  %v1564_v2 = vpop.f32.mrb[49].mxu0 }
 0x2a7   :  { %v853_v21 = vpop.f32.mrb[50].mxu0 }
 0x2a8   :  { %v1275_v40 = vpack.c.bf16 %v851_v45, %v851_v45  ;;  %v854_v59 = vadd.f32 %v2113_v47, %v853_v21  ;;  %v1565_v63 = vpop.f32.mrb[51].mxu0 }
 0x2aa   :  { %1142 = vst.msk [vmem:[%s2312_s7 + $0x10] sm:$0xf] %vm1137_vm2, %v1275_v40  ;;  %v1276_v1 = vpack.c.bf16 %v854_v59, %v854_v59 }
 0x2ac   :  { %1143 = vst.msk [vmem:[%s2312_s7 + $0x14] sm:$0xf] %vm1137_vm2, %v1276_v1 }
 0x2ad   :  { %v858_v3 = vpop.f32.mrb[52].mxu0 }
 0x2ae   :  { %v859_v4 = vadd.f32 %v2113_v47, %v858_v3  ;;  %v1568_v6 = vpop.f32.mrb[53].mxu0 }
 0x2af   :  { %v861_v7 = vpop.f32.mrb[54].mxu0 }
 0x2b0   :  { %v1277_v8 = vpack.c.bf16 %v859_v4, %v859_v4  ;;  %v862_v9 = vadd.f32 %v2113_v47, %v861_v7  ;;  %v1569_v10 = vpop.f32.mrb[55].mxu0 }
 0x2b2   :  { %1144 = vst.msk [vmem:[%s2312_s7 + $0x18] sm:$0xf] %vm1137_vm2, %v1277_v8  ;;  %v1278_v11 = vpack.c.bf16 %v862_v9, %v862_v9 }
 0x2b4   :  { %1145 = vst.msk [vmem:[%s2312_s7 + $0x1c] sm:$0xf] %vm1137_vm2, %v1278_v11 }
 0x2b5   :  { %v866_v12 = vpop.f32.mrb[56].mxu0 }
 0x2b6   :  { %v867_v13 = vadd.f32 %v2113_v47, %v866_v12  ;;  %v1572_v14 = vpop.f32.mrb[57].mxu0 }
 0x2b7   :  { %v869_v15 = vpop.f32.mrb[58].mxu0 }
 0x2b8   :  { %v1279_v16 = vpack.c.bf16 %v867_v13, %v867_v13  ;;  %v870_v17 = vadd.f32 %v2113_v47, %v869_v15  ;;  %v1573_v18 = vpop.f32.mrb[59].mxu0 }
 0x2ba   :  { %1146 = vst.msk [vmem:[%s2312_s7 + $0x20] sm:$0xf] %vm1137_vm2, %v1279_v16  ;;  %v1280_v19 = vpack.c.bf16 %v870_v17, %v870_v17 }
 0x2bc   :  { %1147 = vst.msk [vmem:[%s2312_s7 + $0x24] sm:$0xf] %vm1137_vm2, %v1280_v19 }
 0x2bd   :  { %v874_v20 = vpop.f32.mrb[60].mxu0 }
 0x2be   :  { %v875_v22 = vadd.f32 %v2113_v47, %v874_v20  ;;  %v1576_v23 = vpop.f32.mrb[61].mxu0 }
 0x2bf   :  { %v877_v24 = vpop.f32.mrb[62].mxu0 }
 0x2c0   :  { %v1281_v25 = vpack.c.bf16 %v875_v22, %v875_v22  ;;  %v878_v26 = vadd.f32 %v2113_v47, %v877_v24  ;;  %v1577_v28 = vpop.f32.mrb[63].mxu0 }
 0x2c2   :  { %1148 = vst.msk [vmem:[%s2312_s7 + $0x28] sm:$0xf] %vm1137_vm2, %v1281_v25  ;;  %v1282_v29 = vpack.c.bf16 %v878_v26, %v878_v26 }
 0x2c4   :  { %1149 = vst.msk [vmem:[%s2312_s7 + $0x2c] sm:$0xf] %vm1137_vm2, %v1282_v29 }
 0x2c5   :  { %v882_v30 = vpop.f32.mrb[64].mxu0 }
 0x2c6   :  { %v883_v31 = vadd.f32 %v2113_v47, %v882_v30  ;;  %v1580_v32 = vpop.f32.mrb[65].mxu0 }
 0x2c7   :  { %v885_v33 = vpop.f32.mrb[66].mxu0 }
 0x2c8   :  { %v1283_v34 = vpack.c.bf16 %v883_v31, %v883_v31  ;;  %v886_v35 = vadd.f32 %v2113_v47, %v885_v33  ;;  %v1581_v36 = vpop.f32.mrb[67].mxu0 }
 0x2ca   :  { %1150 = vst.msk [vmem:[%s2312_s7 + $0x30] sm:$0xf] %vm1137_vm2, %v1283_v34  ;;  %v1284_v37 = vpack.c.bf16 %v886_v35, %v886_v35 }
 0x2cc   :  { %1151 = vst.msk [vmem:[%s2312_s7 + $0x34] sm:$0xf] %vm1137_vm2, %v1284_v37 }
 0x2cd   :  { %v890_v38 = vpop.f32.mrb[68].mxu0 }
 0x2ce   :  { %v891_v39 = vadd.f32 %v2113_v47, %v890_v38  ;;  %v1584_v41 = vpop.f32.mrb[69].mxu0 }
 0x2cf   :  { %v893_v42 = vpop.f32.mrb[70].mxu0 }
 0x2d0   :  { %v1285_v43 = vpack.c.bf16 %v891_v39, %v891_v39  ;;  %v894_v44 = vadd.f32 %v2113_v47, %v893_v42  ;;  %v1585_v46 = vpop.f32.mrb[71].mxu0 }
 0x2d2   :  { %1152 = vst.msk [vmem:[%s2312_s7 + $0x38] sm:$0xf] %vm1137_vm2, %v1285_v43  ;;  %v1286_v48 = vpack.c.bf16 %v894_v44, %v894_v44 }
 0x2d4   :  { %1153 = vst.msk [vmem:[%s2312_s7 + $0x3c] sm:$0xf] %vm1137_vm2, %v1286_v48 }
 0x2d5   :  { %v898_v49 = vpop.f32.mrb[72].mxu0 }
 0x2d6   :  { %v899_v50 = vadd.f32 %v2113_v47, %v898_v49  ;;  %v1588_v51 = vpop.f32.mrb[73].mxu0 }
 0x2d7   :  { %v901_v0 = vpop.f32.mrb[74].mxu0 }
 0x2d8   :  { %v1287_v5 = vpack.c.bf16 %v899_v50, %v899_v50  ;;  %v902_v52 = vadd.f32 %v2113_v47, %v901_v0  ;;  %v1589_v53 = vpop.f32.mrb[75].mxu0 }
 0x2da   :  { %1154 = vst.msk [vmem:[%s2312_s7 + $0x40] sm:$0xf] %vm1137_vm2, %v1287_v5  ;;  %v1288_v54 = vpack.c.bf16 %v902_v52, %v902_v52 }
 0x2dc   :  { %1155 = vst.msk [vmem:[%s2312_s7 + $0x44] sm:$0xf] %vm1137_vm2, %v1288_v54 }
 0x2dd   :  { %v906_v55 = vpop.f32.mrb[76].mxu0 }
 0x2de   :  { %v907_v56 = vadd.f32 %v2113_v47, %v906_v55  ;;  %v1592_v57 = vpop.f32.mrb[77].mxu0 }
 0x2df   :  { %v909_v58 = vpop.f32.mrb[78].mxu0 }
 0x2e0   :  { %v1289_v60 = vpack.c.bf16 %v907_v56, %v907_v56  ;;  %v910_v61 = vadd.f32 %v2113_v47, %v909_v58  ;;  %v1593_v62 = vpop.f32.mrb[79].mxu0 }
 0x2e2   :  { %1156 = vst.msk [vmem:[%s2312_s7 + $0x48] sm:$0xf] %vm1137_vm2, %v1289_v60  ;;  %v1290_v27 = vpack.c.bf16 %v910_v61, %v910_v61 }
 0x2e4   :  { %1157 = vst.msk [vmem:[%s2312_s7 + $0x4c] sm:$0xf] %vm1137_vm2, %v1290_v27 }
 0x2e5   :  { %v914_v45 = vpop.f32.mrb[80].mxu0 }
 0x2e6   :  { %v915_v2 = vadd.f32 %v2113_v47, %v914_v45  ;;  %v1596_v21 = vpop.f32.mrb[81].mxu0 }
 0x2e7   :  { %v917_v40 = vpop.f32.mrb[82].mxu0 }
 0x2e8   :  { %v1291_v59 = vpack.c.bf16 %v915_v2, %v915_v2  ;;  %v918_v63 = vadd.f32 %v2113_v47, %v917_v40  ;;  %v1597_v1 = vpop.f32.mrb[83].mxu0 }
 0x2ea   :  { %1158 = vst.msk [vmem:[%s2312_s7 + $0x50] sm:$0xf] %vm1137_vm2, %v1291_v59  ;;  %v1292_v3 = vpack.c.bf16 %v918_v63, %v918_v63 }
 0x2ec   :  { %1159 = vst.msk [vmem:[%s2312_s7 + $0x54] sm:$0xf] %vm1137_vm2, %v1292_v3 }
 0x2ed   :  { %v922_v4 = vpop.f32.mrb[84].mxu0 }
 0x2ee   :  { %v923_v6 = vadd.f32 %v2113_v47, %v922_v4  ;;  %v1600_v7 = vpop.f32.mrb[85].mxu0 }
 0x2ef   :  { %v925_v8 = vpop.f32.mrb[86].mxu0 }
 0x2f0   :  { %v1293_v9 = vpack.c.bf16 %v923_v6, %v923_v6  ;;  %v926_v10 = vadd.f32 %v2113_v47, %v925_v8  ;;  %v1601_v11 = vpop.f32.mrb[87].mxu0 }
 0x2f2   :  { %1160 = vst.msk [vmem:[%s2312_s7 + $0x58] sm:$0xf] %vm1137_vm2, %v1293_v9  ;;  %v1294_v12 = vpack.c.bf16 %v926_v10, %v926_v10 }
 0x2f4   :  { %1161 = vst.msk [vmem:[%s2312_s7 + $0x5c] sm:$0xf] %vm1137_vm2, %v1294_v12 }
 0x2f5   :  { %v930_v13 = vpop.f32.mrb[88].mxu0 }
 0x2f6   :  { %v931_v14 = vadd.f32 %v2113_v47, %v930_v13  ;;  %v1604_v15 = vpop.f32.mrb[89].mxu0 }
 0x2f7   :  { %v933_v16 = vpop.f32.mrb[90].mxu0 }
 0x2f8   :  { %v1295_v17 = vpack.c.bf16 %v931_v14, %v931_v14  ;;  %v934_v18 = vadd.f32 %v2113_v47, %v933_v16  ;;  %v1605_v19 = vpop.f32.mrb[91].mxu0 }
 0x2fa   :  { %1162 = vst.msk [vmem:[%s2312_s7 + $0x60] sm:$0xf] %vm1137_vm2, %v1295_v17  ;;  %v1296_v20 = vpack.c.bf16 %v934_v18, %v934_v18 }
 0x2fc   :  { %1163 = vst.msk [vmem:[%s2312_s7 + $0x64] sm:$0xf] %vm1137_vm2, %v1296_v20 }
 0x2fd   :  { %v938_v22 = vpop.f32.mrb[92].mxu0 }
 0x2fe   :  { %v939_v23 = vadd.f32 %v2113_v47, %v938_v22  ;;  %v1608_v24 = vpop.f32.mrb[93].mxu0 }
 0x2ff   :  { %v941_v25 = vpop.f32.mrb[94].mxu0 }
 0x300   :  { %v1297_v26 = vpack.c.bf16 %v939_v23, %v939_v23  ;;  %v942_v28 = vadd.f32 %v2113_v47, %v941_v25  ;;  %v1609_v29 = vpop.f32.mrb[95].mxu0 }
 0x302   :  { %1164 = vst.msk [vmem:[%s2312_s7 + $0x68] sm:$0xf] %vm1137_vm2, %v1297_v26  ;;  %v1298_v30 = vpack.c.bf16 %v942_v28, %v942_v28 }
 0x304   :  { %1165 = vst.msk [vmem:[%s2312_s7 + $0x6c] sm:$0xf] %vm1137_vm2, %v1298_v30 }
 0x305   :  { %v946_v31 = vpop.f32.mrb[96].mxu0 }
 0x306   :  { %v947_v32 = vadd.f32 %v2113_v47, %v946_v31  ;;  %v1612_v33 = vpop.f32.mrb[97].mxu0 }
 0x307   :  { %v949_v34 = vpop.f32.mrb[98].mxu0 }
 0x308   :  { %v1299_v35 = vpack.c.bf16 %v947_v32, %v947_v32  ;;  %v950_v36 = vadd.f32 %v2113_v47, %v949_v34  ;;  %v1613_v37 = vpop.f32.mrb[99].mxu0 }
 0x30a   :  { %1166 = vst.msk [vmem:[%s2312_s7 + $0x70] sm:$0xf] %vm1137_vm2, %v1299_v35  ;;  %v1300_v38 = vpack.c.bf16 %v950_v36, %v950_v36 }
 0x30c   :  { %1167 = vst.msk [vmem:[%s2312_s7 + $0x74] sm:$0xf] %vm1137_vm2, %v1300_v38 }
 0x30d   :  { %v954_v39 = vpop.f32.mrb[100].mxu0 }
 0x30e   :  { %v955_v41 = vadd.f32 %v2113_v47, %v954_v39  ;;  %v1616_v42 = vpop.f32.mrb[101].mxu0 }
 0x30f   :  { %v957_v43 = vpop.f32.mrb[102].mxu0 }
 0x310   :  { %v1301_v44 = vpack.c.bf16 %v955_v41, %v955_v41  ;;  %v958_v46 = vadd.f32 %v2113_v47, %v957_v43  ;;  %v1617_v48 = vpop.f32.mrb[103].mxu0 }
 0x312   :  { %1168 = vst.msk [vmem:[%s2312_s7 + $0x78] sm:$0xf] %vm1137_vm2, %v1301_v44  ;;  %v1302_v49 = vpack.c.bf16 %v958_v46, %v958_v46 }
 0x314   :  { %1169 = vst.msk [vmem:[%s2312_s7 + $0x7c] sm:$0xf] %vm1137_vm2, %v1302_v49 }
 0x315   :  { %v962_v50 = vpop.f32.mrb[104].mxu0 }
 0x316   :  { %v963_v51 = vadd.f32 %v2113_v47, %v962_v50  ;;  %v1620_v0 = vpop.f32.mrb[105].mxu0 }
 0x317   :  { %v965_v5 = vpop.f32.mrb[106].mxu0 }
 0x318   :  { %v1303_v52 = vpack.c.bf16 %v963_v51, %v963_v51  ;;  %v966_v53 = vadd.f32 %v2113_v47, %v965_v5  ;;  %v1621_v54 = vpop.f32.mrb[107].mxu0 }
 0x31a   :  { %1170 = vst.msk [vmem:[%s2312_s7 + $0x80] sm:$0xf] %vm1137_vm2, %v1303_v52  ;;  %v1304_v55 = vpack.c.bf16 %v966_v53, %v966_v53 }
 0x31c   :  { %1171 = vst.msk [vmem:[%s2312_s7 + $0x84] sm:$0xf] %vm1137_vm2, %v1304_v55 }
 0x31d   :  { %v970_v56 = vpop.f32.mrb[108].mxu0 }
 0x31e   :  { %v971_v57 = vadd.f32 %v2113_v47, %v970_v56  ;;  %v1624_v58 = vpop.f32.mrb[109].mxu0 }
 0x31f   :  { %v973_v60 = vpop.f32.mrb[110].mxu0 }
 0x320   :  { %v1305_v61 = vpack.c.bf16 %v971_v57, %v971_v57  ;;  %v974_v62 = vadd.f32 %v2113_v47, %v973_v60  ;;  %v1625_v27 = vpop.f32.mrb[111].mxu0 }
 0x322   :  { %1172 = vst.msk [vmem:[%s2312_s7 + $0x88] sm:$0xf] %vm1137_vm2, %v1305_v61  ;;  %v1306_v45 = vpack.c.bf16 %v974_v62, %v974_v62 }
 0x324   :  { %1173 = vst.msk [vmem:[%s2312_s7 + $0x8c] sm:$0xf] %vm1137_vm2, %v1306_v45 }
 0x325   :  { %v978_v2 = vpop.f32.mrb[112].mxu0 }
 0x326   :  { %v979_v21 = vadd.f32 %v2113_v47, %v978_v2  ;;  %v1628_v40 = vpop.f32.mrb[113].mxu0 }
 0x327   :  { %v981_v59 = vpop.f32.mrb[114].mxu0 }
 0x328   :  { %v1307_v63 = vpack.c.bf16 %v979_v21, %v979_v21  ;;  %v982_v1 = vadd.f32 %v2113_v47, %v981_v59  ;;  %v1629_v3 = vpop.f32.mrb[115].mxu0 }
 0x32a   :  { %1174 = vst.msk [vmem:[%s2312_s7 + $0x90] sm:$0xf] %vm1137_vm2, %v1307_v63  ;;  %v1308_v4 = vpack.c.bf16 %v982_v1, %v982_v1 }
 0x32c   :  { %1175 = vst.msk [vmem:[%s2312_s7 + $0x94] sm:$0xf] %vm1137_vm2, %v1308_v4 }

</bundles_post_ra>
